<compile_context>
chip_gen: v6e
topology: v6e:2x2x1
jax: 0.10.0
libtpu: 0.0.40
codegen_flags: <defaults>
</compile_context>

<pallas_src>
import functools

import jax
import jax.numpy as jnp
from jax import lax
from jax.experimental import pallas as pl
from jax.experimental.pallas import tpu as pltpu


# ----------------------------------------------------------------------------
# helpers
# ----------------------------------------------------------------------------
def _pick_tile(dim, candidates):
    """Largest candidate that evenly divides `dim`, else the full dim."""
    for c in candidates:
        if dim >= c and dim % c == 0:
            return c
    return dim


def _layer_norm(h, g, b, eps=1e-5):
    mu = jnp.mean(h, axis=-1, keepdims=True)
    var = jnp.mean((h - mu) ** 2, axis=-1, keepdims=True)
    return (h - mu) * lax.rsqrt(var + eps) * g + b


# ----------------------------------------------------------------------------
# Kernel 1: LN1 + QKV projection, row-tiled over flattened tokens
# ----------------------------------------------------------------------------
def qkv_kernel(x_ref, ln1g_ref, ln1b_ref, wqkv_ref, bqkv_ref,
               q_ref, k_ref, v_ref):
    x = x_ref[...]                                        # (TR, H)
    H = x.shape[1]
    h = _layer_norm(x, ln1g_ref[...], ln1b_ref[...])
    qkv = jnp.dot(h, wqkv_ref[...], preferred_element_type=jnp.float32)
    qkv = qkv + bqkv_ref[...]
    q_ref[...] = qkv[:, :H]
    k_ref[...] = qkv[:, H:2 * H]
    v_ref[...] = qkv[:, 2 * H:]


# ----------------------------------------------------------------------------
# Kernel 2: causal attention (query-tiled) + residual + MLP + final LN
# grid = (B, S // TQ)
# ----------------------------------------------------------------------------
def attn_mlp_kernel(q_ref, k_ref, v_ref, x_ref, amask_ref,
                    wo_ref, bo_ref, ln2g_ref, ln2b_ref,
                    wfc_ref, bfc_ref, wproj_ref, bproj_ref,
                    lnfg_ref, lnfb_ref, out_ref):
    q = q_ref[0]                                          # (TQ, H)
    k = k_ref[0]                                          # (S,  H)
    v = v_ref[0]                                          # (S,  H)
    x = x_ref[0]                                          # (TQ, H)
    TQ, H = q.shape
    S = k.shape[0]

    # fold 1/sqrt(H) into q: O(TQ*H) instead of O(TQ*S) on the scores
    q = q * (1.0 / float(H) ** 0.5)

    # q @ k^T without an explicit transpose (contract dim 1 with dim 1)
    scores = lax.dot_general(q, k, (((1,), (1,)), ((), ())),
                             preferred_element_type=jnp.float32)   # (TQ, S)

    q0 = pl.program_id(1) * TQ
    row = q0 + lax.broadcasted_iota(jnp.int32, (TQ, S), 0)
    col = lax.broadcasted_iota(jnp.int32, (TQ, S), 1)
    key_valid = amask_ref[0] > 0.5                                 # (1, S)
    mask = jnp.logical_and(col <= row, key_valid)
    scores = jnp.where(mask, scores, -1e9)

    m = jnp.max(scores, axis=-1, keepdims=True)
    p = jnp.exp(scores - m)
    denom = jnp.sum(p, axis=-1, keepdims=True)
    p = p * pl.reciprocal(denom, approx=True)                      # EUP, not VALU

    attn = jnp.dot(p, v, preferred_element_type=jnp.float32)       # (TQ, H)
    attn = jnp.dot(attn, wo_ref[...],
                   preferred_element_type=jnp.float32) + bo_ref[...]
    x = x + attn

    h2 = _layer_norm(x, ln2g_ref[...], ln2b_ref[...])
    ff = jnp.dot(h2, wfc_ref[...],
                 preferred_element_type=jnp.float32) + bfc_ref[...]
    ff = jax.nn.gelu(ff, approximate=True)
    ff = jnp.dot(ff, wproj_ref[...],
                 preferred_element_type=jnp.float32) + bproj_ref[...]
    x = x + ff

    out_ref[0] = _layer_norm(x, lnfg_ref[...], lnfb_ref[...])


# ----------------------------------------------------------------------------
# Kernel 3: lm_head  logits[n, v] = sum_h hid[n, h] * wte[v, h]
# grid = (N // TN, V // TV); bf16 inputs, f32 accumulate
# ----------------------------------------------------------------------------
def lm_head_kernel(h_ref, wte_ref, logits_ref):
    logits_ref[...] = lax.dot_general(
        h_ref[...], wte_ref[...], (((1,), (1,)), ((), ())),
        preferred_element_type=jnp.float32)


# ----------------------------------------------------------------------------
# Kernel 4: v_head  Linear(H, 2H) -> ReLU -> VPU reduction against (1, 2H) row
# grid = (N // TN,)
# ----------------------------------------------------------------------------
def v_head_kernel(h_ref, w1_ref, b1_ref, w2_ref, b2_ref, value_ref):
    z = jnp.dot(h_ref[...], w1_ref[...],
                preferred_element_type=jnp.float32) + b1_ref[...]
    z = jnp.maximum(z, 0.0)
    # second projection as a VPU reduce (avoids a 1-wide MXU RHS).
    # TODO(synk): output stays (N, 1) (lane-sparse store); value traffic is
    # N*4 bytes so a lane-dense relayout is not worth the extra transpose.
    value_ref[...] = jnp.sum(z * w2_ref[...], axis=-1, keepdims=True) + b2_ref[...]


# ----------------------------------------------------------------------------
# Wrapper: mirrors CausalLMWithValueHead.forward(return_dict=False)
# ----------------------------------------------------------------------------
def causal_lm_with_value_head(params, input_ids, attention_mask):
    """Returns (lm_logits [B,S,V] f32, value [B,S] f32)."""
    B, S = input_ids.shape
    V, H = params["wte"].shape
    blk = params["block"]
    vh = params["v_head"]
    H2 = vh["w1"].shape[1]
    N = B * S

    # glue: embedding lookup (gather bf16 rows, upcast the small result)
    x = params["wte"][input_ids].astype(jnp.float32) \
        + params["wpe"][jnp.arange(S)][None, :, :]
    amask = attention_mask.astype(jnp.float32).reshape(B, 1, S)

    # tile sizes (sized against v7x's 64 MiB VMEM; also fine on v5e/v6e)
    TR = _pick_tile(N, (512, 256, 128))     # qkv / v_head row tile
    TQ = _pick_tile(S, (256, 128))          # attention query tile
    TN = _pick_tile(N, (256, 128))          # lm_head row tile
    TV = _pick_tile(V, (512, 256, 128))     # lm_head vocab tile

    # ---------------- kernel 1: LN1 + QKV projection ----------------
    x2d = x.reshape(N, H)
    w1d = lambda i: (0, 0)
    q2d, k2d, v2d = pl.pallas_call(
        qkv_kernel,
        out_shape=tuple(jax.ShapeDtypeStruct((N, H), jnp.float32) for _ in range(3)),
        grid=(N // TR,),
        in_specs=[
            pl.BlockSpec((TR, H), lambda i: (i, 0)),
            pl.BlockSpec(blk["ln1_g"].shape, w1d),
            pl.BlockSpec(blk["ln1_b"].shape, w1d),
            pl.BlockSpec(blk["w_qkv"].shape, w1d),
            pl.BlockSpec(blk["b_qkv"].shape, w1d),
        ],
        out_specs=tuple(pl.BlockSpec((TR, H), lambda i: (i, 0)) for _ in range(3)),
        compiler_params=pltpu.CompilerParams(dimension_semantics=("parallel",)),
    )(x2d, blk["ln1_g"], blk["ln1_b"], blk["w_qkv"], blk["b_qkv"])

    q3 = q2d.reshape(B, S, H)
    k3 = k2d.reshape(B, S, H)
    v3 = v2d.reshape(B, S, H)

    # ---------------- kernel 2: attention + MLP (query-tiled) ----------------
    w2d = lambda b, qi: (0, 0)
    attn_flops = B * (4 * S * S * H + 2 * S * H * H + 16 * S * H * H)
    attn_bytes = 5 * B * S * H * 4 + (9 * H * H + 12 * H) * 4 + B * S * 4
    hidden = pl.pallas_call(
        attn_mlp_kernel,
        out_shape=jax.ShapeDtypeStruct((B, S, H), jnp.float32),
        grid=(B, S // TQ),
        in_specs=[
            pl.BlockSpec((1, TQ, H), lambda b, qi: (b, qi, 0)),   # q block
            pl.BlockSpec((1, S, H),  lambda b, qi: (b, 0, 0)),    # k (full seq)
            pl.BlockSpec((1, S, H),  lambda b, qi: (b, 0, 0)),    # v (full seq)
            pl.BlockSpec((1, TQ, H), lambda b, qi: (b, qi, 0)),   # x residual
            pl.BlockSpec((1, 1, S),  lambda b, qi: (b, 0, 0)),    # attention mask
            pl.BlockSpec(blk["w_o"].shape, w2d),
            pl.BlockSpec(blk["b_o"].shape, w2d),
            pl.BlockSpec(blk["ln2_g"].shape, w2d),
            pl.BlockSpec(blk["ln2_b"].shape, w2d),
            pl.BlockSpec(blk["w_fc"].shape, w2d),
            pl.BlockSpec(blk["b_fc"].shape, w2d),
            pl.BlockSpec(blk["w_proj"].shape, w2d),
            pl.BlockSpec(blk["b_proj"].shape, w2d),
            pl.BlockSpec(blk["lnf_g"].shape, w2d),
            pl.BlockSpec(blk["lnf_b"].shape, w2d),
        ],
        out_specs=pl.BlockSpec((1, TQ, H), lambda b, qi: (b, qi, 0)),
        compiler_params=pltpu.CompilerParams(
            dimension_semantics=("parallel", "parallel")),
        cost_estimate=pl.CostEstimate(
            flops=int(attn_flops),
            transcendentals=int(B * S * S + B * S * 4 * H),
            bytes_accessed=int(attn_bytes)),
    )(q3, k3, v3, x, amask,
      blk["w_o"], blk["b_o"], blk["ln2_g"], blk["ln2_b"],
      blk["w_fc"], blk["b_fc"], blk["w_proj"], blk["b_proj"],
      blk["lnf_g"], blk["lnf_b"])

    # ---------------- kernel 3: tied lm_head (bf16 in, f32 accumulate) -------
    h2d_bf16 = hidden.reshape(N, H).astype(jnp.bfloat16)
    logits2d = pl.pallas_call(
        lm_head_kernel,
        out_shape=jax.ShapeDtypeStruct((N, V), jnp.float32),
        grid=(N // TN, V // TV),
        in_specs=[
            pl.BlockSpec((TN, H), lambda i, j: (i, 0)),
            pl.BlockSpec((TV, H), lambda i, j: (j, 0)),           # wte rows, no .T
        ],
        out_specs=pl.BlockSpec((TN, TV), lambda i, j: (i, j)),
        compiler_params=pltpu.CompilerParams(
            dimension_semantics=("parallel", "parallel"),
            vmem_limit_bytes=48 * 1024 * 1024),
        cost_estimate=pl.CostEstimate(
            flops=int(2 * N * H * V),
            transcendentals=0,
            bytes_accessed=int(N * H * 2 + V * H * 2 + N * V * 4)),
    )(h2d_bf16, params["wte"])

    # ---------------- kernel 4: v_head ----------------
    value2d = pl.pallas_call(
        v_head_kernel,
        out_shape=jax.ShapeDtypeStruct((N, 1), jnp.float32),
        grid=(N // TR,),
        in_specs=[
            pl.BlockSpec((TR, H), lambda i: (i, 0)),
            pl.BlockSpec((H, H2), lambda i: (0, 0)),
            pl.BlockSpec((1, H2), lambda i: (0, 0)),
            pl.BlockSpec((1, H2), lambda i: (0, 0)),
            pl.BlockSpec((1, 1),  lambda i: (0, 0)),
        ],
        out_specs=pl.BlockSpec((TR, 1), lambda i: (i, 0)),
        compiler_params=pltpu.CompilerParams(dimension_semantics=("parallel",)),
    )(h2d_bf16, vh["w1"], vh["b1"], vh["w2"], vh["b2"])

    lm_logits = logits2d.reshape(B, S, V)
    value = value2d.reshape(B, S)                                  # .squeeze(-1)
    return lm_logits, value


# ----------------------------------------------------------------------------
# Deterministic parameter construction
# ----------------------------------------------------------------------------
def init_params(key, vocab, seq_max, hidden):
    ks = jax.random.split(key, 10)
    def n(k, shape, dtype=jnp.float32, s=0.02):
        return (s * jax.random.normal(k, shape)).astype(dtype)
    H = hidden
    return {
        # tied embedding / lm_head weight stored bf16, (V, H): fed straight to
        # the MXU (no transpose, no per-call cast of a V*H tensor).
        "wte": n(ks[0], (vocab, H), jnp.bfloat16),
        "wpe": n(ks[1], (seq_max, H)),
        "block": {
            "ln1_g": jnp.ones((1, H), jnp.float32),
            "ln1_b": jnp.zeros((1, H), jnp.float32),
            "w_qkv": n(ks[2], (H, 3 * H)),
            "b_qkv": jnp.zeros((1, 3 * H), jnp.float32),
            "w_o":   n(ks[3], (H, H)),
            "b_o":   jnp.zeros((1, H), jnp.float32),
            "ln2_g": jnp.ones((1, H), jnp.float32),
            "ln2_b": jnp.zeros((1, H), jnp.float32),
            "w_fc":  n(ks[4], (H, 4 * H)),
            "b_fc":  jnp.zeros((1, 4 * H), jnp.float32),
            "w_proj": n(ks[5], (4 * H, H)),
            "b_proj": jnp.zeros((1, H), jnp.float32),
            "lnf_g": jnp.ones((1, H), jnp.float32),
            "lnf_b": jnp.zeros((1, H), jnp.float32),
        },
        # v_head = make_head(H, 1): Linear(H, 2H) -> ReLU -> Linear(2H, 1)
        # (w2 stored as a (1, 2H) row; dtype of w1 follows lm_head dtype).
        "v_head": {
            "w1": n(ks[6], (H, 2 * H), jnp.bfloat16),
            "b1": jnp.zeros((1, 2 * H), jnp.float32),
            "w2": n(ks[7], (1, 2 * H)),
            "b2": jnp.zeros((1, 1), jnp.float32),
        },
    }


# ----------------------------------------------------------------------------
# Pure-JAX reference (same math, f32) for a correctness sanity check
# ----------------------------------------------------------------------------
def reference_forward(params, input_ids, attention_mask):
    B, S = input_ids.shape
    V, H = params["wte"].shape
    blk = params["block"]
    wte = params["wte"].astype(jnp.float32)
    x = wte[input_ids] + params["wpe"][jnp.arange(S)][None]

    def ln(h, g, b):
        mu = jnp.mean(h, -1, keepdims=True)
        var = jnp.mean((h - mu) ** 2, -1, keepdims=True)
        return (h - mu) * lax.rsqrt(var + 1e-5) * g + b

    h = ln(x, blk["ln1_g"], blk["ln1_b"])
    qkv = h @ blk["w_qkv"] + blk["b_qkv"]
    q, k, v = qkv[..., :H], qkv[..., H:2 * H], qkv[..., 2 * H:]
    scores = jnp.einsum("bqh,bkh->bqk", q, k) / jnp.sqrt(jnp.float32(H))
    causal = jnp.tril(jnp.ones((S, S), bool))[None]
    keym = (attention_mask > 0.5)[:, None, :]
    scores = jnp.where(causal & keym, scores, -1e9)
    p = jax.nn.softmax(scores, -1)
    attn = jnp.einsum("bqk,bkh->bqh", p, v) @ blk["w_o"] + blk["b_o"]
    x = x + attn
    h2 = ln(x, blk["ln2_g"], blk["ln2_b"])
    ff = jax.nn.gelu(h2 @ blk["w_fc"] + blk["b_fc"], approximate=True)
    x = x + ff @ blk["w_proj"] + blk["b_proj"]
    hid = ln(x, blk["lnf_g"], blk["lnf_b"])

    logits = hid @ wte.T
    vh = params["v_head"]
    z = jnp.maximum(hid @ vh["w1"].astype(jnp.float32) + vh["b1"], 0.0)
    value = jnp.sum(z * vh["w2"], axis=-1) + vh["b2"][0, 0]
    return logits, value


if __name__ == "__main__":
    B, S, H, V = 2, 8, 32, 128

    key = jax.random.PRNGKey(0)
    kp, kids = jax.random.split(key)
    params = init_params(kp, vocab=V, seq_max=S, hidden=H)

    input_ids = jax.random.randint(kids, (B, S), 0, V, dtype=jnp.int32)
    attention_mask = jnp.ones((B, S), jnp.float32)

    fwd = jax.jit(functools.partial(causal_lm_with_value_head, params))
    lm_logits, value = fwd(input_ids, attention_mask)
    jax.block_until_ready((lm_logits, value))

    assert lm_logits.shape == (B, S, V) and value.shape == (B, S)

    # bf16 lm_head/v_head matmuls + approx-reciprocal softmax => looser tolerance
    ref_logits, ref_value = reference_forward(params, input_ids, attention_mask)
    assert jnp.allclose(lm_logits, ref_logits, rtol=2e-2, atol=2e-2), \
        float(jnp.max(jnp.abs(lm_logits - ref_logits)))
    assert jnp.allclose(value, ref_value, rtol=2e-2, atol=2e-2), \
        float(jnp.max(jnp.abs(value - ref_value)))

    print("KERNEL_OK")
</pallas_src>

<mosaic_0001>
module attributes {stable_mosaic.version = 11 : i64} {
  func.func @attn_mlp_kernel(%arg0: i32, %arg1: i32, %arg2: memref<1x8x32xf32, #tpu.memory_space<vmem>>, %arg3: memref<1x8x32xf32, #tpu.memory_space<vmem>>, %arg4: memref<1x8x32xf32, #tpu.memory_space<vmem>>, %arg5: memref<1x8x32xf32, #tpu.memory_space<vmem>>, %arg6: memref<1x1x8xf32, #tpu.memory_space<vmem>>, %arg7: memref<32x32xf32, #tpu.memory_space<vmem>>, %arg8: memref<1x32xf32, #tpu.memory_space<vmem>>, %arg9: memref<1x32xf32, #tpu.memory_space<vmem>>, %arg10: memref<1x32xf32, #tpu.memory_space<vmem>>, %arg11: memref<32x128xf32, #tpu.memory_space<vmem>>, %arg12: memref<1x128xf32, #tpu.memory_space<vmem>>, %arg13: memref<128x32xf32, #tpu.memory_space<vmem>>, %arg14: memref<1x32xf32, #tpu.memory_space<vmem>>, %arg15: memref<1x32xf32, #tpu.memory_space<vmem>>, %arg16: memref<1x32xf32, #tpu.memory_space<vmem>>, %arg17: memref<1x8x32xf32, #tpu.memory_space<vmem>>) attributes {dimension_semantics = [#tpu.dimension_semantics<parallel>, #tpu.dimension_semantics<parallel>], iteration_bounds = array<i64: 2, 1>, scalar_prefetch = 0 : i64, scratch_operands = 0 : i64, tpu.core_type = #tpu.core_type<tc>, window_params = [{transform_indices = @transform_0, window_bounds = array<i64: 1, 8, 32>}, {transform_indices = @transform_1, window_bounds = array<i64: 1, 8, 32>}, {transform_indices = @transform_2, window_bounds = array<i64: 1, 8, 32>}, {transform_indices = @transform_3, window_bounds = array<i64: 1, 8, 32>}, {transform_indices = @transform_4, window_bounds = array<i64: 1, 1, 8>}, {pipeline_mode = #tpu.pipeline_mode<synchronous>, transform_indices = @transform_5, window_bounds = array<i64: 32, 32>}, {pipeline_mode = #tpu.pipeline_mode<synchronous>, transform_indices = @transform_6, window_bounds = array<i64: 1, 32>}, {pipeline_mode = #tpu.pipeline_mode<synchronous>, transform_indices = @transform_7, window_bounds = array<i64: 1, 32>}, {pipeline_mode = #tpu.pipeline_mode<synchronous>, transform_indices = @transform_8, window_bounds = array<i64: 1, 32>}, {pipeline_mode = #tpu.pipeline_mode<synchronous>, transform_indices = @transform_9, window_bounds = array<i64: 32, 128>}, {pipeline_mode = #tpu.pipeline_mode<synchronous>, transform_indices = @transform_10, window_bounds = array<i64: 1, 128>}, {pipeline_mode = #tpu.pipeline_mode<synchronous>, transform_indices = @transform_11, window_bounds = array<i64: 128, 32>}, {pipeline_mode = #tpu.pipeline_mode<synchronous>, transform_indices = @transform_12, window_bounds = array<i64: 1, 32>}, {pipeline_mode = #tpu.pipeline_mode<synchronous>, transform_indices = @transform_13, window_bounds = array<i64: 1, 32>}, {pipeline_mode = #tpu.pipeline_mode<synchronous>, transform_indices = @transform_14, window_bounds = array<i64: 1, 32>}, {transform_indices = @transform_15, window_bounds = array<i64: 1, 8, 32>}]} {
    %c0 = arith.constant 0 : index
    %c0_0 = arith.constant 0 : index
    %c0_1 = arith.constant 0 : index
    %0 = vector.load %arg2[%c0, %c0_0, %c0_1] : memref<1x8x32xf32, #tpu.memory_space<vmem>>, vector<1x8x32xf32>
    %1 = vector.shape_cast %0 : vector<1x8x32xf32> to vector<8x32xf32>
    %c0_2 = arith.constant 0 : index
    %c0_3 = arith.constant 0 : index
    %c0_4 = arith.constant 0 : index
    %2 = vector.load %arg3[%c0_2, %c0_3, %c0_4] : memref<1x8x32xf32, #tpu.memory_space<vmem>>, vector<1x8x32xf32>
    %3 = vector.shape_cast %2 : vector<1x8x32xf32> to vector<8x32xf32>
    %c0_5 = arith.constant 0 : index
    %c0_6 = arith.constant 0 : index
    %c0_7 = arith.constant 0 : index
    %4 = vector.load %arg4[%c0_5, %c0_6, %c0_7] : memref<1x8x32xf32, #tpu.memory_space<vmem>>, vector<1x8x32xf32>
    %5 = vector.shape_cast %4 : vector<1x8x32xf32> to vector<8x32xf32>
    %c0_8 = arith.constant 0 : index
    %c0_9 = arith.constant 0 : index
    %c0_10 = arith.constant 0 : index
    %6 = vector.load %arg5[%c0_8, %c0_9, %c0_10] : memref<1x8x32xf32, #tpu.memory_space<vmem>>, vector<1x8x32xf32>
    %7 = vector.shape_cast %6 : vector<1x8x32xf32> to vector<8x32xf32>
    %cst = arith.constant 0.176776692 : f32
    %8 = vector.broadcast %cst : f32 to vector<8x32xf32>
    %9 = arith.mulf %1, %8 : vector<8x32xf32>
    %cst_11 = arith.constant dense<0.000000e+00> : vector<8x8xf32>
    %10 = tpu.matmul %9, %3, %cst_11 {dimension_numbers = #tpu.dot_dimension_numbers<[1], [1], [0], [0], [0, 0, 1, 0], [], []>} : vector<8x32xf32>, vector<8x32xf32>, vector<8x8xf32> -> vector<8x8xf32>
    %c8_i32 = arith.constant 8 : i32
    %11 = arith.muli %arg1, %c8_i32 : i32
    %12 = tpu.iota {dimensions = array<i32: 0>} : vector<8x8xi32>
    %13 = vector.broadcast %11 : i32 to vector<8x8xi32>
    %14 = arith.addi %13, %12 : vector<8x8xi32>
    %15 = tpu.iota {dimensions = array<i32: 1>} : vector<8x8xi32>
    %c0_12 = arith.constant 0 : index
    %c0_13 = arith.constant 0 : index
    %c0_14 = arith.constant 0 : index
    %16 = vector.load %arg6[%c0_12, %c0_13, %c0_14] : memref<1x1x8xf32, #tpu.memory_space<vmem>>, vector<1x1x8xf32>
    %17 = vector.shape_cast %16 : vector<1x1x8xf32> to vector<1x8xf32>
    %cst_15 = arith.constant 5.000000e-01 : f32
    %18 = vector.broadcast %cst_15 : f32 to vector<1x8xf32>
    %19 = arith.cmpf ogt, %17, %18 : vector<1x8xf32>
    %20 = arith.cmpi sle, %15, %14 : vector<8x8xi32>
    %21 = vector.broadcast %19 : vector<1x8xi1> to vector<8x8xi1>
    %22 = arith.andi %20, %21 : vector<8x8xi1>
    %cst_16 = arith.constant -1.000000e+09 : f32
    %23 = vector.broadcast %cst_16 : f32 to vector<8x8xf32>
    %24 = arith.select %22, %10, %23 : vector<8x8xi1>, vector<8x8xf32>
    %cst_17 = arith.constant dense<0xFF800000> : vector<8xf32>
    %25 = vector.multi_reduction <maximumf>, %24, %cst_17 [1] : vector<8x8xf32> to vector<8xf32>
    %26 = vector.shape_cast %25 : vector<8xf32> to vector<8x1xf32>
    %27 = vector.broadcast %26 : vector<8x1xf32> to vector<8x8xf32>
    %28 = arith.subf %24, %27 : vector<8x8xf32>
    %29 = math.exp %28 : vector<8x8xf32>
    %cst_18 = arith.constant dense<0.000000e+00> : vector<8xf32>
    %30 = vector.multi_reduction <add>, %29, %cst_18 [1] : vector<8x8xf32> to vector<8xf32>
    %31 = vector.shape_cast %30 : vector<8xf32> to vector<8x1xf32>
    %32 = tpu.reciprocal %31 {approx = true} : vector<8x1xf32> -> vector<8x1xf32>
    %33 = vector.broadcast %32 : vector<8x1xf32> to vector<8x8xf32>
    %34 = arith.mulf %29, %33 : vector<8x8xf32>
    %cst_19 = arith.constant dense<0.000000e+00> : vector<8x32xf32>
    %35 = tpu.matmul %34, %5, %cst_19 {dimension_numbers = #tpu.dot_dimension_numbers<[1], [0], [0], [1], [0, 0, 1, 1], [], []>} : vector<8x8xf32>, vector<8x32xf32>, vector<8x32xf32> -> vector<8x32xf32>
    %c0_20 = arith.constant 0 : index
    %c0_21 = arith.constant 0 : index
    %36 = vector.load %arg7[%c0_20, %c0_21] : memref<32x32xf32, #tpu.memory_space<vmem>>, vector<32x32xf32>
    %cst_22 = arith.constant dense<0.000000e+00> : vector<8x32xf32>
    %37 = tpu.matmul %35, %36, %cst_22 {dimension_numbers = #tpu.dot_dimension_numbers<[1], [0], [0], [1], [0, 0, 1, 1], [], []>} : vector<8x32xf32>, vector<32x32xf32>, vector<8x32xf32> -> vector<8x32xf32>
    %c0_23 = arith.constant 0 : index
    %c0_24 = arith.constant 0 : index
    %38 = vector.load %arg8[%c0_23, %c0_24] : memref<1x32xf32, #tpu.memory_space<vmem>>, vector<1x32xf32>
    %39 = vector.broadcast %38 : vector<1x32xf32> to vector<8x32xf32>
    %40 = arith.addf %37, %39 : vector<8x32xf32>
    %41 = arith.addf %7, %40 : vector<8x32xf32>
    %c0_25 = arith.constant 0 : index
    %c0_26 = arith.constant 0 : index
    %42 = vector.load %arg9[%c0_25, %c0_26] : memref<1x32xf32, #tpu.memory_space<vmem>>, vector<1x32xf32>
    %c0_27 = arith.constant 0 : index
    %c0_28 = arith.constant 0 : index
    %43 = vector.load %arg10[%c0_27, %c0_28] : memref<1x32xf32, #tpu.memory_space<vmem>>, vector<1x32xf32>
    %cst_29 = arith.constant dense<0.000000e+00> : vector<8xf32>
    %44 = vector.multi_reduction <add>, %41, %cst_29 [1] : vector<8x32xf32> to vector<8xf32>
    %45 = vector.shape_cast %44 : vector<8xf32> to vector<8x1xf32>
    %cst_30 = arith.constant 3.200000e+01 : f32
    %46 = vector.broadcast %cst_30 : f32 to vector<8x1xf32>
    %47 = arith.divf %45, %46 : vector<8x1xf32>
    %48 = vector.broadcast %47 : vector<8x1xf32> to vector<8x32xf32>
    %49 = arith.subf %41, %48 : vector<8x32xf32>
    %50 = arith.mulf %49, %49 : vector<8x32xf32>
    %cst_31 = arith.constant dense<0.000000e+00> : vector<8xf32>
    %51 = vector.multi_reduction <add>, %50, %cst_31 [1] : vector<8x32xf32> to vector<8xf32>
    %52 = vector.shape_cast %51 : vector<8xf32> to vector<8x1xf32>
    %cst_32 = arith.constant 3.200000e+01 : f32
    %53 = vector.broadcast %cst_32 : f32 to vector<8x1xf32>
    %54 = arith.divf %52, %53 : vector<8x1xf32>
    %55 = vector.broadcast %47 : vector<8x1xf32> to vector<8x32xf32>
    %56 = arith.subf %41, %55 : vector<8x32xf32>
    %cst_33 = arith.constant 9.99999974E-6 : f32
    %57 = vector.broadcast %cst_33 : f32 to vector<8x1xf32>
    %58 = arith.addf %54, %57 : vector<8x1xf32>
    %59 = math.rsqrt %58 : vector<8x1xf32>
    %60 = vector.broadcast %59 : vector<8x1xf32> to vector<8x32xf32>
    %61 = arith.mulf %56, %60 : vector<8x32xf32>
    %62 = vector.broadcast %42 : vector<1x32xf32> to vector<8x32xf32>
    %63 = arith.mulf %61, %62 : vector<8x32xf32>
    %64 = vector.broadcast %43 : vector<1x32xf32> to vector<8x32xf32>
    %65 = arith.addf %63, %64 : vector<8x32xf32>
    %c0_34 = arith.constant 0 : index
    %c0_35 = arith.constant 0 : index
    %66 = vector.load %arg11[%c0_34, %c0_35] : memref<32x128xf32, #tpu.memory_space<vmem>>, vector<32x128xf32>
    %cst_36 = arith.constant dense<0.000000e+00> : vector<8x128xf32>
    %67 = tpu.matmul %65, %66, %cst_36 {dimension_numbers = #tpu.dot_dimension_numbers<[1], [0], [0], [1], [0, 0, 1, 1], [], []>} : vector<8x32xf32>, vector<32x128xf32>, vector<8x128xf32> -> vector<8x128xf32>
    %c0_37 = arith.constant 0 : index
    %c0_38 = arith.constant 0 : index
    %68 = vector.load %arg12[%c0_37, %c0_38] : memref<1x128xf32, #tpu.memory_space<vmem>>, vector<1x128xf32>
    %69 = vector.broadcast %68 : vector<1x128xf32> to vector<8x128xf32>
    %70 = arith.addf %67, %69 : vector<8x128xf32>
    %71 = arith.mulf %70, %70 : vector<8x128xf32>
    %72 = arith.mulf %70, %71 : vector<8x128xf32>
    %cst_39 = arith.constant 4.471500e-02 : f32
    %73 = vector.broadcast %cst_39 : f32 to vector<8x128xf32>
    %74 = arith.mulf %73, %72 : vector<8x128xf32>
    %75 = arith.addf %70, %74 : vector<8x128xf32>
    %cst_40 = arith.constant 0.797884583 : f32
    %76 = vector.broadcast %cst_40 : f32 to vector<8x128xf32>
    %77 = arith.mulf %76, %75 : vector<8x128xf32>
    %78 = math.tanh %77 : vector<8x128xf32>
    %cst_41 = arith.constant 1.000000e+00 : f32
    %79 = vector.broadcast %cst_41 : f32 to vector<8x128xf32>
    %80 = arith.addf %79, %78 : vector<8x128xf32>
    %cst_42 = arith.constant 5.000000e-01 : f32
    %81 = vector.broadcast %cst_42 : f32 to vector<8x128xf32>
    %82 = arith.mulf %81, %80 : vector<8x128xf32>
    %83 = arith.mulf %70, %82 : vector<8x128xf32>
    %c0_43 = arith.constant 0 : index
    %c0_44 = arith.constant 0 : index
    %84 = vector.load %arg13[%c0_43, %c0_44] : memref<128x32xf32, #tpu.memory_space<vmem>>, vector<128x32xf32>
    %cst_45 = arith.constant dense<0.000000e+00> : vector<8x32xf32>
    %85 = tpu.matmul %83, %84, %cst_45 {dimension_numbers = #tpu.dot_dimension_numbers<[1], [0], [0], [1], [0, 0, 1, 1], [], []>} : vector<8x128xf32>, vector<128x32xf32>, vector<8x32xf32> -> vector<8x32xf32>
    %c0_46 = arith.constant 0 : index
    %c0_47 = arith.constant 0 : index
    %86 = vector.load %arg14[%c0_46, %c0_47] : memref<1x32xf32, #tpu.memory_space<vmem>>, vector<1x32xf32>
    %87 = vector.broadcast %86 : vector<1x32xf32> to vector<8x32xf32>
    %88 = arith.addf %85, %87 : vector<8x32xf32>
    %89 = arith.addf %41, %88 : vector<8x32xf32>
    %c0_48 = arith.constant 0 : index
    %c0_49 = arith.constant 0 : index
    %90 = vector.load %arg15[%c0_48, %c0_49] : memref<1x32xf32, #tpu.memory_space<vmem>>, vector<1x32xf32>
    %c0_50 = arith.constant 0 : index
    %c0_51 = arith.constant 0 : index
    %91 = vector.load %arg16[%c0_50, %c0_51] : memref<1x32xf32, #tpu.memory_space<vmem>>, vector<1x32xf32>
    %cst_52 = arith.constant dense<0.000000e+00> : vector<8xf32>
    %92 = vector.multi_reduction <add>, %89, %cst_52 [1] : vector<8x32xf32> to vector<8xf32>
    %93 = vector.shape_cast %92 : vector<8xf32> to vector<8x1xf32>
    %cst_53 = arith.constant 3.200000e+01 : f32
    %94 = vector.broadcast %cst_53 : f32 to vector<8x1xf32>
    %95 = arith.divf %93, %94 : vector<8x1xf32>
    %96 = vector.broadcast %95 : vector<8x1xf32> to vector<8x32xf32>
    %97 = arith.subf %89, %96 : vector<8x32xf32>
    %98 = arith.mulf %97, %97 : vector<8x32xf32>
    %cst_54 = arith.constant dense<0.000000e+00> : vector<8xf32>
    %99 = vector.multi_reduction <add>, %98, %cst_54 [1] : vector<8x32xf32> to vector<8xf32>
    %100 = vector.shape_cast %99 : vector<8xf32> to vector<8x1xf32>
    %cst_55 = arith.constant 3.200000e+01 : f32
    %101 = vector.broadcast %cst_55 : f32 to vector<8x1xf32>
    %102 = arith.divf %100, %101 : vector<8x1xf32>
    %103 = vector.broadcast %95 : vector<8x1xf32> to vector<8x32xf32>
    %104 = arith.subf %89, %103 : vector<8x32xf32>
    %cst_56 = arith.constant 9.99999974E-6 : f32
    %105 = vector.broadcast %cst_56 : f32 to vector<8x1xf32>
    %106 = arith.addf %102, %105 : vector<8x1xf32>
    %107 = math.rsqrt %106 : vector<8x1xf32>
    %108 = vector.broadcast %107 : vector<8x1xf32> to vector<8x32xf32>
    %109 = arith.mulf %104, %108 : vector<8x32xf32>
    %110 = vector.broadcast %90 : vector<1x32xf32> to vector<8x32xf32>
    %111 = arith.mulf %109, %110 : vector<8x32xf32>
    %112 = vector.broadcast %91 : vector<1x32xf32> to vector<8x32xf32>
    %113 = arith.addf %111, %112 : vector<8x32xf32>
    %c0_57 = arith.constant 0 : index
    %c0_58 = arith.constant 0 : index
    %c0_59 = arith.constant 0 : index
    %114 = vector.load %arg17[%c0_57, %c0_58, %c0_59] : memref<1x8x32xf32, #tpu.memory_space<vmem>>, vector<1x8x32xf32>
    %115 = vector.shape_cast %114 : vector<1x8x32xf32> to vector<8x32xf32>
    %116 = vector.shape_cast %113 : vector<8x32xf32> to vector<1x8x32xf32>
    tpu.vector_store %arg17[%c0_57, %c0_58, %c0_59], %116 {strides = array<i32>} : memref<1x8x32xf32, #tpu.memory_space<vmem>>, vector<1x8x32xf32>,
    return
  }
  func.func @transform_0(%arg0: i32, %arg1: i32) -> (i32, i32, i32) {
    %c0_i32 = arith.constant 0 : i32
    %c0_i32_0 = arith.constant 0 : i32
    return %arg0, %arg1, %c0_i32 : i32, i32, i32
  }
  func.func @transform_1(%arg0: i32, %arg1: i32) -> (i32, i32, i32) {
    %c0_i32 = arith.constant 0 : i32
    %c0_i32_0 = arith.constant 0 : i32
    %c0_i32_1 = arith.constant 0 : i32
    return %arg0, %c0_i32, %c0_i32_0 : i32, i32, i32
  }
  func.func @transform_2(%arg0: i32, %arg1: i32) -> (i32, i32, i32) {
    %c0_i32 = arith.constant 0 : i32
    %c0_i32_0 = arith.constant 0 : i32
    %c0_i32_1 = arith.constant 0 : i32
    return %arg0, %c0_i32, %c0_i32_0 : i32, i32, i32
  }
  func.func @transform_3(%arg0: i32, %arg1: i32) -> (i32, i32, i32) {
    %c0_i32 = arith.constant 0 : i32
    %c0_i32_0 = arith.constant 0 : i32
    return %arg0, %arg1, %c0_i32 : i32, i32, i32
  }
  func.func @transform_4(%arg0: i32, %arg1: i32) -> (i32, i32, i32) {
    %c0_i32 = arith.constant 0 : i32
    %c0_i32_0 = arith.constant 0 : i32
    %c0_i32_1 = arith.constant 0 : i32
    return %arg0, %c0_i32, %c0_i32_0 : i32, i32, i32
  }
  func.func @transform_5(%arg0: i32, %arg1: i32) -> (i32, i32) {
    %c0_i32 = arith.constant 0 : i32
    %c0_i32_0 = arith.constant 0 : i32
    %c0_i32_1 = arith.constant 0 : i32
    return %c0_i32, %c0_i32_0 : i32, i32
  }
  func.func @transform_6(%arg0: i32, %arg1: i32) -> (i32, i32) {
    %c0_i32 = arith.constant 0 : i32
    %c0_i32_0 = arith.constant 0 : i32
    %c0_i32_1 = arith.constant 0 : i32
    return %c0_i32, %c0_i32_0 : i32, i32
  }
  func.func @transform_7(%arg0: i32, %arg1: i32) -> (i32, i32) {
    %c0_i32 = arith.constant 0 : i32
    %c0_i32_0 = arith.constant 0 : i32
    %c0_i32_1 = arith.constant 0 : i32
    return %c0_i32, %c0_i32_0 : i32, i32
  }
  func.func @transform_8(%arg0: i32, %arg1: i32) -> (i32, i32) {
    %c0_i32 = arith.constant 0 : i32
    %c0_i32_0 = arith.constant 0 : i32
    %c0_i32_1 = arith.constant 0 : i32
    return %c0_i32, %c0_i32_0 : i32, i32
  }
  func.func @transform_9(%arg0: i32, %arg1: i32) -> (i32, i32) {
    %c0_i32 = arith.constant 0 : i32
    %c0_i32_0 = arith.constant 0 : i32
    %c0_i32_1 = arith.constant 0 : i32
    return %c0_i32, %c0_i32_0 : i32, i32
  }
  func.func @transform_10(%arg0: i32, %arg1: i32) -> (i32, i32) {
    %c0_i32 = arith.constant 0 : i32
    %c0_i32_0 = arith.constant 0 : i32
    %c0_i32_1 = arith.constant 0 : i32
    return %c0_i32, %c0_i32_0 : i32, i32
  }
  func.func @transform_11(%arg0: i32, %arg1: i32) -> (i32, i32) {
    %c0_i32 = arith.constant 0 : i32
    %c0_i32_0 = arith.constant 0 : i32
    %c0_i32_1 = arith.constant 0 : i32
    return %c0_i32, %c0_i32_0 : i32, i32
  }
  func.func @transform_12(%arg0: i32, %arg1: i32) -> (i32, i32) {
    %c0_i32 = arith.constant 0 : i32
    %c0_i32_0 = arith.constant 0 : i32
    %c0_i32_1 = arith.constant 0 : i32
    return %c0_i32, %c0_i32_0 : i32, i32
  }
  func.func @transform_13(%arg0: i32, %arg1: i32) -> (i32, i32) {
    %c0_i32 = arith.constant 0 : i32
    %c0_i32_0 = arith.constant 0 : i32
    %c0_i32_1 = arith.constant 0 : i32
    return %c0_i32, %c0_i32_0 : i32, i32
  }
  func.func @transform_14(%arg0: i32, %arg1: i32) -> (i32, i32) {
    %c0_i32 = arith.constant 0 : i32
    %c0_i32_0 = arith.constant 0 : i32
    %c0_i32_1 = arith.constant 0 : i32
    return %c0_i32, %c0_i32_0 : i32, i32
  }
  func.func @transform_15(%arg0: i32, %arg1: i32) -> (i32, i32, i32) {
    %c0_i32 = arith.constant 0 : i32
    %c0_i32_0 = arith.constant 0 : i32
    return %arg0, %arg1, %c0_i32 : i32, i32, i32
  }
}

module attributes {stable_mosaic.version = 11 : i64} {
  func.func @qkv_kernel(%arg0: i32, %arg1: memref<16x32xf32, #tpu.memory_space<vmem>>, %arg2: memref<1x32xf32, #tpu.memory_space<vmem>>, %arg3: memref<1x32xf32, #tpu.memory_space<vmem>>, %arg4: memref<32x96xf32, #tpu.memory_space<vmem>>, %arg5: memref<1x96xf32, #tpu.memory_space<vmem>>, %arg6: memref<16x32xf32, #tpu.memory_space<vmem>>, %arg7: memref<16x32xf32, #tpu.memory_space<vmem>>, %arg8: memref<16x32xf32, #tpu.memory_space<vmem>>) attributes {dimension_semantics = [#tpu.dimension_semantics<parallel>], iteration_bounds = array<i64: 1>, scalar_prefetch = 0 : i64, scratch_operands = 0 : i64, tpu.core_type = #tpu.core_type<tc>, window_params = [{transform_indices = @transform_0, window_bounds = array<i64: 16, 32>}, {pipeline_mode = #tpu.pipeline_mode<synchronous>, transform_indices = @transform_1, window_bounds = array<i64: 1, 32>}, {pipeline_mode = #tpu.pipeline_mode<synchronous>, transform_indices = @transform_2, window_bounds = array<i64: 1, 32>}, {pipeline_mode = #tpu.pipeline_mode<synchronous>, transform_indices = @transform_3, window_bounds = array<i64: 32, 96>}, {pipeline_mode = #tpu.pipeline_mode<synchronous>, transform_indices = @transform_4, window_bounds = array<i64: 1, 96>}, {transform_indices = @transform_5, window_bounds = array<i64: 16, 32>}, {transform_indices = @transform_6, window_bounds = array<i64: 16, 32>}, {transform_indices = @transform_7, window_bounds = array<i64: 16, 32>}]} {
    %c0 = arith.constant 0 : index
    %c0_0 = arith.constant 0 : index
    %0 = vector.load %arg1[%c0, %c0_0] : memref<16x32xf32, #tpu.memory_space<vmem>>, vector<16x32xf32>
    %c0_1 = arith.constant 0 : index
    %c0_2 = arith.constant 0 : index
    %1 = vector.load %arg2[%c0_1, %c0_2] : memref<1x32xf32, #tpu.memory_space<vmem>>, vector<1x32xf32>
    %c0_3 = arith.constant 0 : index
    %c0_4 = arith.constant 0 : index
    %2 = vector.load %arg3[%c0_3, %c0_4] : memref<1x32xf32, #tpu.memory_space<vmem>>, vector<1x32xf32>
    %cst = arith.constant dense<0.000000e+00> : vector<16xf32>
    %3 = vector.multi_reduction <add>, %0, %cst [1] : vector<16x32xf32> to vector<16xf32>
    %4 = vector.shape_cast %3 : vector<16xf32> to vector<16x1xf32>
    %cst_5 = arith.constant 3.200000e+01 : f32
    %5 = vector.broadcast %cst_5 : f32 to vector<16x1xf32>
    %6 = arith.divf %4, %5 : vector<16x1xf32>
    %7 = vector.broadcast %6 : vector<16x1xf32> to vector<16x32xf32>
    %8 = arith.subf %0, %7 : vector<16x32xf32>
    %9 = arith.mulf %8, %8 : vector<16x32xf32>
    %cst_6 = arith.constant dense<0.000000e+00> : vector<16xf32>
    %10 = vector.multi_reduction <add>, %9, %cst_6 [1] : vector<16x32xf32> to vector<16xf32>
    %11 = vector.shape_cast %10 : vector<16xf32> to vector<16x1xf32>
    %cst_7 = arith.constant 3.200000e+01 : f32
    %12 = vector.broadcast %cst_7 : f32 to vector<16x1xf32>
    %13 = arith.divf %11, %12 : vector<16x1xf32>
    %14 = vector.broadcast %6 : vector<16x1xf32> to vector<16x32xf32>
    %15 = arith.subf %0, %14 : vector<16x32xf32>
    %cst_8 = arith.constant 9.99999974E-6 : f32
    %16 = vector.broadcast %cst_8 : f32 to vector<16x1xf32>
    %17 = arith.addf %13, %16 : vector<16x1xf32>
    %18 = math.rsqrt %17 : vector<16x1xf32>
    %19 = vector.broadcast %18 : vector<16x1xf32> to vector<16x32xf32>
    %20 = arith.mulf %15, %19 : vector<16x32xf32>
    %21 = vector.broadcast %1 : vector<1x32xf32> to vector<16x32xf32>
    %22 = arith.mulf %20, %21 : vector<16x32xf32>
    %23 = vector.broadcast %2 : vector<1x32xf32> to vector<16x32xf32>
    %24 = arith.addf %22, %23 : vector<16x32xf32>
    %c0_9 = arith.constant 0 : index
    %c0_10 = arith.constant 0 : index
    %25 = vector.load %arg4[%c0_9, %c0_10] : memref<32x96xf32, #tpu.memory_space<vmem>>, vector<32x96xf32>
    %cst_11 = arith.constant dense<0.000000e+00> : vector<16x96xf32>
    %26 = tpu.matmul %24, %25, %cst_11 {dimension_numbers = #tpu.dot_dimension_numbers<[1], [0], [0], [1], [0, 0, 1, 1], [], []>} : vector<16x32xf32>, vector<32x96xf32>, vector<16x96xf32> -> vector<16x96xf32>
    %c0_12 = arith.constant 0 : index
    %c0_13 = arith.constant 0 : index
    %27 = vector.load %arg5[%c0_12, %c0_13] : memref<1x96xf32, #tpu.memory_space<vmem>>, vector<1x96xf32>
    %28 = vector.broadcast %27 : vector<1x96xf32> to vector<16x96xf32>
    %29 = arith.addf %26, %28 : vector<16x96xf32>
    %30 = vector.extract_strided_slice %29 {offsets = [0, 0], sizes = [16, 32], strides = [1, 1]} : vector<16x96xf32> to vector<16x32xf32>
    %c0_14 = arith.constant 0 : index
    %c0_15 = arith.constant 0 : index
    %31 = vector.load %arg6[%c0_14, %c0_15] : memref<16x32xf32, #tpu.memory_space<vmem>>, vector<16x32xf32>
    tpu.vector_store %arg6[%c0_14, %c0_15], %30 {strides = array<i32>} : memref<16x32xf32, #tpu.memory_space<vmem>>, vector<16x32xf32>,
    %32 = vector.extract_strided_slice %29 {offsets = [0, 32], sizes = [16, 32], strides = [1, 1]} : vector<16x96xf32> to vector<16x32xf32>
    %c0_16 = arith.constant 0 : index
    %c0_17 = arith.constant 0 : index
    %33 = vector.load %arg7[%c0_16, %c0_17] : memref<16x32xf32, #tpu.memory_space<vmem>>, vector<16x32xf32>
    tpu.vector_store %arg7[%c0_16, %c0_17], %32 {strides = array<i32>} : memref<16x32xf32, #tpu.memory_space<vmem>>, vector<16x32xf32>,
    %34 = vector.extract_strided_slice %29 {offsets = [0, 64], sizes = [16, 32], strides = [1, 1]} : vector<16x96xf32> to vector<16x32xf32>
    %c0_18 = arith.constant 0 : index
    %c0_19 = arith.constant 0 : index
    %35 = vector.load %arg8[%c0_18, %c0_19] : memref<16x32xf32, #tpu.memory_space<vmem>>, vector<16x32xf32>
    tpu.vector_store %arg8[%c0_18, %c0_19], %34 {strides = array<i32>} : memref<16x32xf32, #tpu.memory_space<vmem>>, vector<16x32xf32>,
    return
  }
  func.func @transform_0(%arg0: i32) -> (i32, i32) {
    %c0_i32 = arith.constant 0 : i32
    %c0_i32_0 = arith.constant 0 : i32
    return %arg0, %c0_i32 : i32, i32
  }
  func.func @transform_1(%arg0: i32) -> (i32, i32) {
    %c0_i32 = arith.constant 0 : i32
    %c0_i32_0 = arith.constant 0 : i32
    %c0_i32_1 = arith.constant 0 : i32
    return %c0_i32, %c0_i32_0 : i32, i32
  }
  func.func @transform_2(%arg0: i32) -> (i32, i32) {
    %c0_i32 = arith.constant 0 : i32
    %c0_i32_0 = arith.constant 0 : i32
    %c0_i32_1 = arith.constant 0 : i32
    return %c0_i32, %c0_i32_0 : i32, i32
  }
  func.func @transform_3(%arg0: i32) -> (i32, i32) {
    %c0_i32 = arith.constant 0 : i32
    %c0_i32_0 = arith.constant 0 : i32
    %c0_i32_1 = arith.constant 0 : i32
    return %c0_i32, %c0_i32_0 : i32, i32
  }
  func.func @transform_4(%arg0: i32) -> (i32, i32) {
    %c0_i32 = arith.constant 0 : i32
    %c0_i32_0 = arith.constant 0 : i32
    %c0_i32_1 = arith.constant 0 : i32
    return %c0_i32, %c0_i32_0 : i32, i32
  }
  func.func @transform_5(%arg0: i32) -> (i32, i32) {
    %c0_i32 = arith.constant 0 : i32
    %c0_i32_0 = arith.constant 0 : i32
    return %arg0, %c0_i32 : i32, i32
  }
  func.func @transform_6(%arg0: i32) -> (i32, i32) {
    %c0_i32 = arith.constant 0 : i32
    %c0_i32_0 = arith.constant 0 : i32
    return %arg0, %c0_i32 : i32, i32
  }
  func.func @transform_7(%arg0: i32) -> (i32, i32) {
    %c0_i32 = arith.constant 0 : i32
    %c0_i32_0 = arith.constant 0 : i32
    return %arg0, %c0_i32 : i32, i32
  }
}

module attributes {stable_mosaic.version = 11 : i64} {
  func.func @v_head_kernel(%arg0: i32, %arg1: memref<16x32xbf16, #tpu.memory_space<vmem>>, %arg2: memref<32x64xbf16, #tpu.memory_space<vmem>>, %arg3: memref<1x64xf32, #tpu.memory_space<vmem>>, %arg4: memref<1x64xf32, #tpu.memory_space<vmem>>, %arg5: memref<1x1xf32, #tpu.memory_space<vmem>>, %arg6: memref<16x1xf32, #tpu.memory_space<vmem>>) attributes {dimension_semantics = [#tpu.dimension_semantics<parallel>], iteration_bounds = array<i64: 1>, scalar_prefetch = 0 : i64, scratch_operands = 0 : i64, tpu.core_type = #tpu.core_type<tc>, window_params = [{transform_indices = @transform_0, window_bounds = array<i64: 16, 32>}, {pipeline_mode = #tpu.pipeline_mode<synchronous>, transform_indices = @transform_1, window_bounds = array<i64: 32, 64>}, {pipeline_mode = #tpu.pipeline_mode<synchronous>, transform_indices = @transform_2, window_bounds = array<i64: 1, 64>}, {pipeline_mode = #tpu.pipeline_mode<synchronous>, transform_indices = @transform_3, window_bounds = array<i64: 1, 64>}, {pipeline_mode = #tpu.pipeline_mode<synchronous>, transform_indices = @transform_4, window_bounds = array<i64: 1, 1>}, {transform_indices = @transform_5, window_bounds = array<i64: 16, 1>}]} {
    %c0 = arith.constant 0 : index
    %c0_0 = arith.constant 0 : index
    %0 = vector.load %arg1[%c0, %c0_0] : memref<16x32xbf16, #tpu.memory_space<vmem>>, vector<16x32xbf16>
    %c0_1 = arith.constant 0 : index
    %c0_2 = arith.constant 0 : index
    %1 = vector.load %arg2[%c0_1, %c0_2] : memref<32x64xbf16, #tpu.memory_space<vmem>>, vector<32x64xbf16>
    %cst = arith.constant dense<0.000000e+00> : vector<16x64xf32>
    %2 = tpu.matmul %0, %1, %cst {dimension_numbers = #tpu.dot_dimension_numbers<[1], [0], [0], [1], [0, 0, 1, 1], [], []>} : vector<16x32xbf16>, vector<32x64xbf16>, vector<16x64xf32> -> vector<16x64xf32>
    %c0_3 = arith.constant 0 : index
    %c0_4 = arith.constant 0 : index
    %3 = vector.load %arg3[%c0_3, %c0_4] : memref<1x64xf32, #tpu.memory_space<vmem>>, vector<1x64xf32>
    %4 = vector.broadcast %3 : vector<1x64xf32> to vector<16x64xf32>
    %5 = arith.addf %2, %4 : vector<16x64xf32>
    %cst_5 = arith.constant 0.000000e+00 : f32
    %6 = vector.broadcast %cst_5 : f32 to vector<16x64xf32>
    %7 = arith.maximumf %5, %6 : vector<16x64xf32>
    %c0_6 = arith.constant 0 : index
    %c0_7 = arith.constant 0 : index
    %8 = vector.load %arg4[%c0_6, %c0_7] : memref<1x64xf32, #tpu.memory_space<vmem>>, vector<1x64xf32>
    %9 = vector.broadcast %8 : vector<1x64xf32> to vector<16x64xf32>
    %10 = arith.mulf %7, %9 : vector<16x64xf32>
    %cst_8 = arith.constant dense<0.000000e+00> : vector<16xf32>
    %11 = vector.multi_reduction <add>, %10, %cst_8 [1] : vector<16x64xf32> to vector<16xf32>
    %12 = vector.shape_cast %11 : vector<16xf32> to vector<16x1xf32>
    %c0_9 = arith.constant 0 : index
    %c0_10 = arith.constant 0 : index
    %13 = vector.load %arg5[%c0_9, %c0_10] : memref<1x1xf32, #tpu.memory_space<vmem>>, vector<1x1xf32>
    %14 = vector.broadcast %13 : vector<1x1xf32> to vector<16x1xf32>
    %15 = arith.addf %12, %14 : vector<16x1xf32>
    %c0_11 = arith.constant 0 : index
    %c0_12 = arith.constant 0 : index
    %16 = vector.load %arg6[%c0_11, %c0_12] : memref<16x1xf32, #tpu.memory_space<vmem>>, vector<16x1xf32>
    tpu.vector_store %arg6[%c0_11, %c0_12], %15 {strides = array<i32>} : memref<16x1xf32, #tpu.memory_space<vmem>>, vector<16x1xf32>,
    return
  }
  func.func @transform_0(%arg0: i32) -> (i32, i32) {
    %c0_i32 = arith.constant 0 : i32
    %c0_i32_0 = arith.constant 0 : i32
    return %arg0, %c0_i32 : i32, i32
  }
  func.func @transform_1(%arg0: i32) -> (i32, i32) {
    %c0_i32 = arith.constant 0 : i32
    %c0_i32_0 = arith.constant 0 : i32
    %c0_i32_1 = arith.constant 0 : i32
    return %c0_i32, %c0_i32_0 : i32, i32
  }
  func.func @transform_2(%arg0: i32) -> (i32, i32) {
    %c0_i32 = arith.constant 0 : i32
    %c0_i32_0 = arith.constant 0 : i32
    %c0_i32_1 = arith.constant 0 : i32
    return %c0_i32, %c0_i32_0 : i32, i32
  }
  func.func @transform_3(%arg0: i32) -> (i32, i32) {
    %c0_i32 = arith.constant 0 : i32
    %c0_i32_0 = arith.constant 0 : i32
    %c0_i32_1 = arith.constant 0 : i32
    return %c0_i32, %c0_i32_0 : i32, i32
  }
  func.func @transform_4(%arg0: i32) -> (i32, i32) {
    %c0_i32 = arith.constant 0 : i32
    %c0_i32_0 = arith.constant 0 : i32
    %c0_i32_1 = arith.constant 0 : i32
    return %c0_i32, %c0_i32_0 : i32, i32
  }
  func.func @transform_5(%arg0: i32) -> (i32, i32) {
    %c0_i32 = arith.constant 0 : i32
    %c0_i32_0 = arith.constant 0 : i32
    return %arg0, %c0_i32 : i32, i32
  }
}

module attributes {stable_mosaic.version = 11 : i64} {
  func.func @lm_head_kernel(%arg0: i32, %arg1: i32, %arg2: memref<16x32xbf16, #tpu.memory_space<vmem>>, %arg3: memref<128x32xbf16, #tpu.memory_space<vmem>>, %arg4: memref<16x128xf32, #tpu.memory_space<vmem>>) attributes {dimension_semantics = [#tpu.dimension_semantics<parallel>, #tpu.dimension_semantics<parallel>], iteration_bounds = array<i64: 1, 1>, scalar_prefetch = 0 : i64, scratch_operands = 0 : i64, tpu.core_type = #tpu.core_type<tc>, window_params = [{transform_indices = @transform_0, window_bounds = array<i64: 16, 32>}, {transform_indices = @transform_1, window_bounds = array<i64: 128, 32>}, {transform_indices = @transform_2, window_bounds = array<i64: 16, 128>}]} {
    %c0 = arith.constant 0 : index
    %c0_0 = arith.constant 0 : index
    %0 = vector.load %arg2[%c0, %c0_0] : memref<16x32xbf16, #tpu.memory_space<vmem>>, vector<16x32xbf16>
    %c0_1 = arith.constant 0 : index
    %c0_2 = arith.constant 0 : index
    %1 = vector.load %arg3[%c0_1, %c0_2] : memref<128x32xbf16, #tpu.memory_space<vmem>>, vector<128x32xbf16>
    %cst = arith.constant dense<0.000000e+00> : vector<16x128xf32>
    %2 = tpu.matmul %0, %1, %cst {dimension_numbers = #tpu.dot_dimension_numbers<[1], [1], [0], [0], [0, 0, 1, 0], [], []>} : vector<16x32xbf16>, vector<128x32xbf16>, vector<16x128xf32> -> vector<16x128xf32>
    %c0_3 = arith.constant 0 : index
    %c0_4 = arith.constant 0 : index
    %3 = vector.load %arg4[%c0_3, %c0_4] : memref<16x128xf32, #tpu.memory_space<vmem>>, vector<16x128xf32>
    tpu.vector_store %arg4[%c0_3, %c0_4], %2 {strides = array<i32>} : memref<16x128xf32, #tpu.memory_space<vmem>>, vector<16x128xf32>,
    return
  }
  func.func @transform_0(%arg0: i32, %arg1: i32) -> (i32, i32) {
    %c0_i32 = arith.constant 0 : i32
    %c0_i32_0 = arith.constant 0 : i32
    return %arg0, %c0_i32 : i32, i32
  }
  func.func @transform_1(%arg0: i32, %arg1: i32) -> (i32, i32) {
    %c0_i32 = arith.constant 0 : i32
    %c0_i32_0 = arith.constant 0 : i32
    return %arg1, %c0_i32 : i32, i32
  }
  func.func @transform_2(%arg0: i32, %arg1: i32) -> (i32, i32) {
    %c0_i32 = arith.constant 0 : i32
    return %arg0, %arg1 : i32, i32
  }
}

</mosaic_0001>

<bundles_post_ra>
// kernel: causal_lm_with_value_head.6
= control target key start
LH: loop header
LB: loop body
LE: loop exit
PB: predicated region body
PF: predicated region fallthrough
CT: control target
= control target key end

     0   :  { %v238_v1 = vmov 0.0   ;;  %vm76_vm0 = vcmask 261120   ;;  %vm239_vm1 = vmmov 0   ;;  %s297_s0 = inlined_call_operand.vmem [shape: bf16[16,32], index: 0, kind: input, shape index: {}]   ;;  %s298_s1 = inlined_call_operand.vmem [shape: bf16[128,32], index: 1, kind: input, shape index: {}]   ;;  %s299_s2 = inlined_call_operand.hbm [shape: f32[16,128], index: 2, kind: output, shape index: {}]  }
   0x1   :  { %v207_v0 = vld [vmem:[%s298_s1 + $0x38] sm:$0xff]   ;;  %182 = vmatprep.subr.bf16.mxu0 %v238_v1  ;;  %v208_v3 = vld [vmem:[%s298_s1 + $0x30] sm:$0xff]   ;;  %198 = vmatprep.mubr.msk.bf16.mxu0 %vm239_vm1, %v238_v1 }
   0x2   :  { %v102_v2 = vsel %vm76_vm0, %v207_v0, 0  ;;  %v99_v4 = vsel %vm76_vm0, %v208_v3, 0 }
   0x3   :  { %183 = vmatpush3.bf16.xpose.msra.mxu0 %v102_v2 }
   0x4   :  { %184 = vmatprep.subr.bf16.mxu0 %v238_v1 }
   0x5   :  { %7 = vsyncpa [#allocation3], 0  ;;  %v209_v5 = vld [vmem:[%s298_s1 + $0x28] sm:$0xff]   ;;  %v210_v7 = vld [vmem:[%s298_s1 + $0x20] sm:$0xff]   ;;  %s240_s27 = smov [#allocation2]  }
   0x6   :  { %v96_v6 = vsel %vm76_vm0, %v209_v5, 0  ;;  %v93_v8 = vsel %vm76_vm0, %v210_v7, 0  ;;  %v211_v9 = vld [vmem:[%s298_s1 + $0x18] sm:$0xff]   ;;  %v212_v11 = vld [vmem:[%s298_s1 + $0x10] sm:$0xff]   ;;  %v213_v13 = vld [vmem:[%s298_s1 + $0x8] sm:$0xff]   ;;  %s152_s28 = sshll.u32 %s240_s27, 4  ;;  %s153_s28 = int_to_ptr.vmem [resolvable:$true] %s152_s28 }
   0x7   :  { %v90_v10 = vsel %vm76_vm0, %v211_v9, 0  ;;  %v87_v12 = vsel %vm76_vm0, %v212_v11, 0  ;;  %v84_v14 = vsel %vm76_vm0, %v213_v13, 0  ;;  %v214_v15 = vld [vmem:[%s298_s1] sm:$0xff]   ;;  %s216_s29 = scalar_lea.vmem %s153_s28, 256  ;;  %p221_p1 = scmp.lt.s32.totalorder %s153_s28, %s153_s28 }
   0x8   :  { %v81_v16 = vsel %vm76_vm0, %v214_v15, 0  ;;  %v215_v17 = vld [vmem:[%s297_s0] sm:$0xff]   ;;  %p217_p0 = scmp.ne.s32.totalorder %s153_s28, %s216_s29  ;;  %p222_p2 = scmp.lt.s32.totalorder %s216_s29, %s216_s29 }
   0xa   :  { %p223_p3 = por %p222_p2, %p221_p1 }
   0xb   :  { %185 = vmatpush3.bf16.xpose.msra.mxu0 %v99_v4 }
   0xc   :  { %186 = vmatprep.subr.bf16.mxu0 %v238_v1  ;;  %p224_p4 = pnand %p223_p3, %p217_p0 }
  0x13   :  { %187 = vmatpush3.bf16.xpose.msra.mxu0 %v96_v6 }
  0x14   :  { %188 = vmatprep.subr.bf16.mxu0 %v238_v1 }
  0x1b   :  { %189 = vmatpush3.bf16.xpose.msra.mxu0 %v93_v8 }
  0x1c   :  { %190 = vmatprep.subr.bf16.mxu0 %v238_v1 }
  0x23   :  { %191 = vmatpush3.bf16.xpose.msra.mxu0 %v90_v10 }
  0x24   :  { %192 = vmatprep.subr.bf16.mxu0 %v238_v1 }
  0x2b   :  { %193 = vmatpush3.bf16.xpose.msra.mxu0 %v87_v12 }
  0x2c   :  { %194 = vmatprep.subr.bf16.mxu0 %v238_v1 }
  0x33   :  { %195 = vmatpush3.bf16.xpose.msra.mxu0 %v84_v14 }
  0x34   :  { %196 = vmatprep.subr.bf16.mxu0 %v238_v1 }
  0x3b   :  { %197 = vmatpush3.bf16.xpose.msra.mxu0 %v81_v16 }
  0x42   :  { %199 = vmatmul.mubr.msk.bf16.vlgmr.msra.gmra.mxu0 %vm76_vm0, %v215_v17 }
 0x102   :  { %v138_v18 = vpop.f32.mrf.mxu0 }
 0x103   :  { %145 = vst [vmem:[#allocation2] sm:$0xff] %v138_v18 }
 0x104   :  { %v200_v19 = vpop.f32.mrf.mxu0 }
 0x106   :  { %v141_v20 = vpop.f32.mrf.mxu0 }
 0x107   :  { %146 = vst [vmem:[#allocation2 + $0x8] sm:$0xff] %v141_v20 }
 0x108   :  { %v201_v21 = vpop.f32.mrf.mxu0 }
 0x109   :  { %227 = shalt.err (!%p224_p4)
}
 0x10a   :  { %s241_s1 = smov 128   ;;  %s242_s0 = smov 8  }
 0x10b   :  { %158 = dma.vmem_to_hbm [thread:$0]  %s153_s28, 256, %s299_s2, [#allocation3], %s241_s1, %s241_s1, %s242_s0  }
 0x10c   :  { %236 = dma.done.wait [#allocation3], 256  }
 0x10d   :  { %237 = vsyncadd [#allocation3], 4294967040 }
 0x10e   :  { %162 = vsyncpa [#allocation3], 1 }

// kernel: causal_lm_with_value_head.7
= control target key start
LH: loop header
LB: loop body
LE: loop exit
PB: predicated region body
PF: predicated region fallthrough
CT: control target
= control target key end

     0   :  { %v155_v0 = vmov 0.0   ;;  %vm156_vm0 = vmmov 0   ;;  %vm53_vm1 = vcmask 261120   ;;  %vm109_vm2 = vcmask 523264   ;;  %s211_s1 = inlined_call_operand.vmem [shape: bf16[32,64], index: 1, kind: input, shape index: {}]   ;;  %s212_s0 = inlined_call_operand.vmem [shape: bf16[16,32], index: 0, kind: input, shape index: {}]   ;;  %s213_s4 = inlined_call_operand.<no memory space> [shape: f32[1,1], index: 4, kind: input, shape index: {}]   ;;  %s214_s2 = inlined_call_operand.vmem [shape: f32[1,64], index: 2, kind: input, shape index: {}]   ;;  %s215_s3 = inlined_call_operand.vmem [shape: f32[1,64], index: 3, kind: input, shape index: {}]   ;;  %s216_s5 = inlined_call_operand.vmem [shape: f32[16,1], index: 5, kind: output, shape index: {}]  }
   0x1   :  { %142 = vmatprep.subr.bf16.mxu0 %v155_v0  ;;  %v152_v1 = vld [vmem:[%s211_s1 + $0x8] sm:$0xff]   ;;  %146 = vmatprep.mubr.msk.bf16.mxu0 %vm156_vm0, %v155_v0  ;;  %v153_v2 = vld [vmem:[%s211_s1] sm:$0xff]   ;;  %v10_v4 = vstv %s213_s4  ;;  %vm125_vm3 = vcmask 7168  }
   0x2   :  { %143 = vmatpush3.bf16.msra.mxu0 %v152_v1  ;;  %v154_v3 = vld [vmem:[%s212_s0] sm:$0xff]   ;;  %11 = vst [vmem:[#allocation2] sm:$0x1] %v10_v4 }
   0x3   :  { %144 = vmatprep.subr.bf16.mxu0 %v155_v0  ;;  %v132_v5 = vld [vmem:[%s214_s2] ss:$0 sm:$0xff] }
   0x4   :  { %v137_v9 = vld [vmem:[%s215_s3] ss:$0 sm:$0xff] }
   0x6   :  { %145 = vmatpush3.bf16.msra.mxu0 %v153_v2 }
   0x9   :  { %147 = vmatmul.mubr.msk.bf16.vlgmr.msra.gmra.mxu0 %vm53_vm1, %v154_v3  ;;  %v138_v19 = vld [vmem:[#allocation2] ss:$0 sm:$0xff] }
  0xc9   :  { %v91_v6 = vpop.f32.mrf.mxu0 }
  0xca   :  { %v92_v7 = vadd.f32 %v132_v5, %v91_v6 }
  0xcb   :  { %v148_v8 = vpop.f32.mrf.mxu0 }
  0xcc   :  { %v98_v10 = vmax.f32 %v92_v7, 0.0 }
  0xcd   :  { %v94_v11 = vpop.f32.mrf.mxu0 }
  0xce   :  { %v95_v12 = vadd.f32 %v132_v5, %v94_v11  ;;  %v107_v13 = vmul.f32 %v137_v9, %v98_v10 }
  0xcf   :  { %v149_v14 = vpop.f32.mrf.mxu0 }
  0xd0   :  { %v99_v15 = vmax.f32 %v95_v12, 0.0  ;;  %v110_v16 = vsel %vm109_vm2, %v107_v13, 0.0 }
  0xd1   :  { %111 = vadd.xlane.f32.xlu0 %v110_v16 }
  0xd2   :  { %v108_v17 = vmul.f32 %v137_v9, %v99_v15 }
  0xd4   :  { %v113_v18 = vsel %vm109_vm2, %v108_v17, 0.0 }
  0xd5   :  { %114 = vadd.xlane.f32.xlu0 %v113_v18 }
 0x15a   :  { %v112_v20 = vpop.xlane.xlu0 %111 }
 0x15b   :  { %v123_v21 = vadd.f32 %v138_v19, %v112_v20 }
 0x15d   :  { %126 = vst.msk [vmem:[%s216_s5] sm:$0xff] %vm125_vm3, %v123_v21 }
 0x15e   :  { %v115_v22 = vpop.xlane.xlu0 %114 }
 0x15f   :  { %v124_v23 = vadd.f32 %v138_v19, %v115_v22 }
 0x161   :  { %127 = vst.msk [vmem:[%s216_s5 + $0x8] sm:$0xff] %vm125_vm3, %v124_v23 }

// kernel: causal_lm_with_value_head.4
= control target key start
LH: loop header
LB: loop body
LE: loop exit
PB: predicated region body
PF: predicated region fallthrough
CT: control target
= control target key end

     0   :  { %vm27_vm0 = vcmask 261120   ;;  %s223_s17 = smov 96   ;;  %s224_s20 = smov 64   ;;  %s322_s0 = inlined_call_operand.vmem [shape: f32[16,32], index: 0, kind: input, shape index: {}]   ;;  %s323_s3 = inlined_call_operand.vmem [shape: f32[32,96], index: 3, kind: input, shape index: {}]   ;;  %s324_s1 = inlined_call_operand.vmem [shape: f32[1,32], index: 1, kind: input, shape index: {}]   ;;  %s325_s2 = inlined_call_operand.vmem [shape: f32[1,32], index: 2, kind: input, shape index: {}]   ;;  %s326_s4 = inlined_call_operand.vmem [shape: f32[1,96], index: 4, kind: input, shape index: {}]   ;;  %s327_s5 = inlined_call_operand.vmem [shape: f32[16,32], index: 5, kind: output, shape index: {0}]   ;;  %s328_s6 = inlined_call_operand.vmem [shape: f32[16,32], index: 6, kind: output, shape index: {1}]   ;;  %s329_s7 = inlined_call_operand.vmem [shape: f32[16,32], index: 7, kind: output, shape index: {2}]  }
   0x1   :  { %v23_v0 = vld [vmem:[%s322_s0] sm:$0xff]  ;;  %v24_v1 = vld [vmem:[%s322_s0 + $0x8] sm:$0xff]  ;;  %v74_v14 = vld [vmem:[%s323_s3 + $0x18] sm:$0xff] }
   0x2   :  { %v28_v2 = vsel %vm27_vm0, %v23_v0, 0.0  ;;  %v31_v3 = vsel %vm27_vm0, %v24_v1, 0.0  ;;  %v73_v15 = vld [vmem:[%s323_s3 + $0x10] sm:$0xff]  ;;  %206 = vmatprep.subr.mxu0 %v74_v14  ;;  %v72_v16 = vld [vmem:[%s323_s3 + $0x8] sm:$0xff]  ;;  %v71_v17 = vld [vmem:[%s323_s3] sm:$0xff] }
   0x3   :  { %29 = vadd.xlane.f32.xlu0 %v28_v2  ;;  %207 = vmatpush3.msra.mxu0 %v74_v14  ;;  %v195_v25 = vld [vmem:[%s324_s1] ss:$0 sm:$0xff] }
   0x4   :  { %208 = vmatprep.subr.mxu0 %v73_v15  ;;  %v196_v27 = vld [vmem:[%s325_s2] ss:$0 sm:$0xff] }
   0x5   :  { %209 = vmatpush3.msra.mxu0 %v73_v15  ;;  %v197_v34 = vld [vmem:[%s326_s4] ss:$0 sm:$0xff] }
   0x6   :  { %210 = vmatprep.subr.mxu0 %v72_v16 }
   0x7   :  { %32 = vadd.xlane.f32.xlu0 %v31_v3  ;;  %211 = vmatpush3.msra.mxu0 %v72_v16 }
   0x8   :  { %212 = vmatprep.subr.mxu0 %v71_v17 }
   0x9   :  { %213 = vmatpush3.msra.mxu0 %v71_v17 }
  0x8c   :  { %v30_v4 = vpop.xlane.xlu0 %29 }
  0x8d   :  { %v35_v5 = vmul.f32 0.03125, %v30_v4 }
  0x8f   :  { %v37_v6 = vsub.f32 %v23_v0, %v35_v5 }
  0x90   :  { %v33_v7 = vpop.xlane.xlu0 %32 }
  0x91   :  { %v36_v8 = vmul.f32 0.03125, %v33_v7  ;;  %v39_v9 = vmul.f32 %v37_v6, %v37_v6 }
  0x93   :  { %v38_v10 = vsub.f32 %v24_v1, %v36_v8  ;;  %v41_v11 = vsel %vm27_vm0, %v39_v9, 0.0 }
  0x94   :  { %42 = vadd.xlane.f32.xlu1 %v41_v11 }
  0x95   :  { %v40_v12 = vmul.f32 %v38_v10, %v38_v10 }
  0x97   :  { %v44_v13 = vsel %vm27_vm0, %v40_v12, 0.0 }
  0x98   :  { %45 = vadd.xlane.f32.xlu1 %v44_v13 }
 0x11d   :  { %v43_v18 = vpop.xlane.xlu1 %42 }
 0x11e   :  { %v47_v19 = vmul.f32 0.03125, %v43_v18 }
 0x120   :  { %v49_v20 = vadd.f32 1e-05, %v47_v19 }
 0x121   :  { %v46_v21 = vpop.xlane.xlu1 %45 }
 0x122   :  { %219 = vrsqrt.f32 %v49_v20  ;;  %v48_v22 = vmul.f32 0.03125, %v46_v21 }
 0x124   :  { %v50_v23 = vadd.f32 1e-05, %v48_v22 }
 0x126   :  { %221 = vrsqrt.f32 %v50_v23 }
 0x12f   :  { %v220_v24 = vpop.eup %219 }
 0x130   :  { %v53_v26 = vmul.f32 %v220_v24, %v37_v6 }
 0x132   :  { %v61_v28 = vmul.f32 %v195_v25, %v53_v26 }
 0x133   :  { %v222_v29 = vpop.eup %221 }
 0x134   :  { %v54_v30 = vmul.f32 %v222_v29, %v38_v10  ;;  %v69_v31 = vadd.f32 %v196_v27, %v61_v28 }
 0x136   :  { %v62_v32 = vmul.f32 %v195_v25, %v54_v30  ;;  %214 = vmatprep.mubr.msk.f32.mxu0 %vm27_vm0, %v69_v31 }
 0x138   :  { %v70_v33 = vadd.f32 %v196_v27, %v62_v32 }
 0x13a   :  { %215 = vmatmul.mubr.msk.f32.vlgmr.msra.gmra.mxu0 %vm27_vm0, %v70_v33 }
 0x1fa   :  { %v216_v35 = vpop.f32.mrf.mxu0 }
 0x1fb   :  { %v160_v36 = vadd.f32 %v216_v35, %v197_v34 }
 0x1fc   :  { %v154_v37 = vpop.f32.mrf.mxu0 }
 0x1fd   :  { %164 = vst.msk [vmem:[%s327_s5 + $0x8] sm:$0xff] %vm27_vm0, %v160_v36  ;;  %v155_v38 = vadd.f32 %v197_v34, %v154_v37  ;;  %169 = vrot.lane.b32.xlu1 %v160_v36, %s223_s17 }
 0x1ff   :  { %163 = vst.msk [vmem:[%s327_s5] sm:$0xff] %vm27_vm0, %v155_v38  ;;  %167 = vrot.lane.b32.xlu0 %v155_v38, %s223_s17 }
 0x201   :  { %175 = vrot.lane.b32.xlu1 %v155_v38, %s224_s20 }
 0x205   :  { %177 = vrot.lane.b32.xlu1 %v160_v36, %s224_s20 }
 0x26f   :  { %v170_v39 = vpop.permute.xlu1 %169 }
 0x270   :  { %174 = vst.msk [vmem:[%s328_s6 + $0x8] sm:$0xff] %vm27_vm0, %v170_v39 }
 0x271   :  { %v168_v40 = vpop.permute.xlu0 %167 }
 0x272   :  { %173 = vst.msk [vmem:[%s328_s6] sm:$0xff] %vm27_vm0, %v168_v40 }
 0x273   :  { %v176_v41 = vpop.permute.xlu1 %175 }
 0x274   :  { %181 = vst.msk [vmem:[%s329_s7] sm:$0xff] %vm27_vm0, %v176_v41 }
 0x277   :  { %v178_v42 = vpop.permute.xlu1 %177 }
 0x278   :  { %182 = vst.msk [vmem:[%s329_s7 + $0x8] sm:$0xff] %vm27_vm0, %v178_v42 }

// kernel: causal_lm_with_value_head.5
= control target key start
LH: loop header
LB: loop body
LE: loop exit
PB: predicated region body
PF: predicated region fallthrough
CT: control target
= control target key end

     0   :  { %s1888_s0 = inlined_call_operand.vmem [shape: f32[2,8,32], index: 0, kind: input, shape index: {}]   ;;  %s1889_s1 = inlined_call_operand.vmem [shape: f32[2,8,32], index: 1, kind: input, shape index: {}]   ;;  %s1890_s2 = inlined_call_operand.vmem [shape: f32[2,8,32], index: 2, kind: input, shape index: {}]   ;;  %s1891_s3 = inlined_call_operand.vmem [shape: f32[2,8,32], index: 3, kind: input, shape index: {}]   ;;  %s1892_s4 = inlined_call_operand.hbm [shape: f32[2,1,8], index: 4, kind: input, shape index: {}]   ;;  %s1893_s5 = inlined_call_operand.vmem [shape: f32[32,32], index: 5, kind: input, shape index: {}]   ;;  %s1894_s6 = inlined_call_operand.vmem [shape: f32[1,32], index: 6, kind: input, shape index: {}, may-alias: {6,8,12,14}]   ;;  %s1895_s7 = inlined_call_operand.vmem [shape: f32[1,32], index: 7, kind: input, shape index: {}, may-alias: {7,13}]   ;;  %s1896_s8 = inlined_call_operand.vmem [shape: f32[1,32], index: 8, kind: input, shape index: {}, may-alias: {6,8,12,14}]   ;;  %s1897_s9 = inlined_call_operand.vmem [shape: f32[32,128], index: 9, kind: input, shape index: {}]   ;;  %s1898_s10 = inlined_call_operand.vmem [shape: f32[1,128], index: 10, kind: input, shape index: {}]   ;;  %s1899_s11 = inlined_call_operand.vmem [shape: f32[128,32], index: 11, kind: input, shape index: {}]   ;;  %s1900_s12 = inlined_call_operand.vmem [shape: f32[1,32], index: 12, kind: input, shape index: {}, may-alias: {6,8,12,14}]   ;;  %s1901_s13 = inlined_call_operand.vmem [shape: f32[1,32], index: 13, kind: input, shape index: {}, may-alias: {7,13}]   ;;  %s1902_s14 = inlined_call_operand.vmem [shape: f32[1,32], index: 14, kind: input, shape index: {}, may-alias: {6,8,12,14}]   ;;  %s1903_s15 = inlined_call_operand.vmem [shape: f32[2,8,32], index: 15, kind: output, shape index: {}]  }
   0x1   :  { %1904 = sst [smem:[#allocation5_spill]] %s1898_s10 }
   0x2   :  { %1905 = sst [smem:[#allocation6_spill]] %s1900_s12 }
   0x3   :  { %1906 = sst [smem:[#allocation7_spill]] %s1901_s13 }
   0x4   :  { %1907 = sst [smem:[#allocation8_spill]] %s1902_s14 }
   0x5   :  { %1908 = sst [smem:[#allocation9_spill]] %s1903_s15 }
   0x6   :  { %20 = vsyncpa [#allocation3], 0 }
   0x7   :  { %22 = vsyncpa [#allocation3 + $0x1], 0  ;;  %s1623_s18 = smov 0   ;;  %s1625_s19 = smov 0  }
   0x8   :  { %s1627_s20 = smov 0   ;;  %s1629_s21 = smov 0  }
   0x9   :  { %s1631_s22 = smov 0   ;;  %s1633_s23 = smov 0  }
   0xa LB: > { %s1268_s24 = sadd.s32 4294967295, %s1537_s23   ;;  %s40_s25 = sadd.s32 1, %s1533_s22  ;;  %s1537_s23 = sphi %s1633_s23, %s28_s23   ;;  %s1533_s22 = sphi %s1631_s22, %s1921_s22   ;;  %s1529_s21 = sphi %s1629_s21, %s1920_s21   ;;  %s1525_s20 = sphi %s1627_s20, %s1919_s20   ;;  %s1521_s19 = sphi %s1625_s19, %s1918_s19   ;;  %s1517_s18 = sphi %s1623_s18, %s1917_s18  }
   0xb   : > { %p42_p0 = scmp.ge.s32.totalorder %s40_s25, 2  ;;  %s155_s26 = sadd.s32 1, %s1525_s20 }
   0xc   : > { %p162_p1 = scmp.ne.s32.totalorder %s1525_s20, %s1521_s19  ;;  %p163_p2 = scmp.eq.s32.totalorder %s1537_s23, 0 }
   0xd   : > { %s1923_s25 = smov (%p42_p0, %s40_s25), 0  ;;  %p168_p4 = scmp.ne.s32.totalorder %s1521_s19, %s1517_s18 }
   0xe   : > { %p1659_p3 = por %p163_p2, %p162_p1  ;;  %s152_s28 = ssub.s32 %s1533_s22, %s1923_s25 }
   0xf   : > { %p169_p5 = scmp.eq.s32.totalorder %s1268_s24, 0  ;;  %p153_p6 = scmp.eq.s32.totalorder %s152_s28, 0 }
  0x10   : > { %p1397_p8 = scmp.lt.s32.totalorder %s1537_s23, 2  ;;  %s494_s16 = sand.u32 1, %s1525_s20  }
  0x11   : > { %p1666_p7 = por %p169_p5, %p168_p4  ;;  %s1272_s17 = sshll.u32 %s1533_s22, 4 }
  0x12   : > { %s1672_s30 = scalar_select %p153_p6, %s1525_s20, %s155_s26  }
  0x13   : > { %s502_s13 = scalar_lea.hbm %s1892_s4, %s1272_s17  ;;  %s497_s12 = scalar_lea.vmem [#allocation2], %s494_s16 }
  0x14   : > { %s504_s10 = sshll.u32 %s497_s12, 4  ;;  %p1681_p9 = pnand %p1397_p8, %p1659_p3  ;;  %s505_s10 = int_to_ptr.vmem [resolvable:$true] %s504_s10 }
  0x15   : > { %p1273_p10 = scmp.ge.s32.totalorder %s1537_s23, 1  ;;  %p509_p11 = scmp.lt.s32.totalorder %s1537_s23, 3 }
  0x16   : > { %s495_s24 = scalar_lea.sflag [#allocation3], %s494_s16  ;;  %p1461_p12 = pneg %p1681_p9 }
  0x17   : > { %s1472_s26 = scalar_lea.vmem %s505_s10, 16  ;;  %s1539_s14 = smov [#allocation2]  }
  0x18   : > { %p1473_p13 = scmp.ne.s32.totalorder %s505_s10, %s1472_s26  ;;  %s1477_s15 = sshll.u32 %s1539_s14, 4  ;;  %s1478_s15 = int_to_ptr.vmem [resolvable:$false] %s1477_s15 }
  0x19   : > { %s1479_s12 = scalar_lea.vmem %s1478_s15, 32  ;;  %p1480_p2 = scmp.lt.s32.totalorder %s505_s10, %s1478_s15 }
  0x1a   : > { %p1475_p0 = pnand %p1473_p13, %p1461_p12  ;;  %p1481_p4 = scmp.lt.s32.totalorder %s1479_s12, %s1472_s26 }
  0x1c   : > { %p1476_p1 = pneg %p1475_p0  ;;  %p1482_p3 = por %p1481_p4, %p1480_p2 }
  0x1e   : > { %p1483_p5 = pnand %p1482_p3, %p1476_p1 }
  0x20   : > { %1486 = shalt.err (!%p1483_p5)
}
  0x21   : > { %1396 = dma.hbm_to_vmem [thread:$0]  (!%p1681_p9), %s502_s13, 16, %s505_s10, %s495_s24  }
  0x22   : > { %p510_p6 = pnand %p1273_p10, %p509_p11 }
  0x23   : > { %s515_s27 = sand.u32 (!%p510_p6), 1, %s1521_s19  }
  0x24   : > { %513 = sbr.rel (%p510_p6) target bundleno = 1986 (0x7c2), region = 80  ;;  %s516_s28 = scalar_lea.sflag (!%p510_p6), [#allocation3], %s515_s27 }
  0x25   : > { %s518_s16 = scalar_lea.vmem (!%p510_p6), [#allocation2], %s515_s27 }
  0x29   : > { %1512 = dma.done.wait (%p1666_p7), %s516_s28, 16  }
  0x2a   : > { %1514 = vsyncadd (%p1666_p7), %s516_s28, 4294967280  ;;  %p588_p8 = scmp.lt.s32.totalorder %s1529_s21, 1  ;;  %v1540_v0 = vmov 0.0   ;;  %vm1541_vm0 = vmmov 0   ;;  %vm622_vm1 = vcmask 261120   ;;  %v700_v4 = vlaneseq  ;;  %v805_v25 = vld [vmem:[%s1893_s5 + $0x18] sm:$0xff] }
  0x2b   : > { %1324 = vmatprep.subr.mxu0 %v1540_v0  ;;  %1326 = vmatprep.mubr.msk.f32.mxu0 %vm1541_vm0, %v1540_v0  ;;  %v706_v5 = vld [vmem:[%s518_s16] sm:$0x1]  ;;  %v1542_v8 = vmov 0   ;;  %vm717_vm6 = vcmask 64512   ;;  %v804_v26 = vld [vmem:[%s1893_s5 + $0x10] sm:$0xff]  ;;  %v803_v27 = vld [vmem:[%s1893_s5 + $0x8] sm:$0xff] }
  0x2c   : > { %s1925_s21 = smov (!%p588_p8, %s1529_s21), 1  ;;  %1356 = vmatprep.subr.mxu1 %v1540_v0  ;;  %1388 = vmatprep.mubr.msk.f32.mxu1 %vm1541_vm0, %v1540_v0  ;;  %v701_v6 = vshrl.u32 %v700_v4, 7  ;;  %vm707_vm2 = vcmp.gt.f32.partialorder %v706_v5, 0.5  ;;  %v705_v10 = vand.u32 127, %v700_v4  ;;  %v802_v28 = vld [vmem:[%s1893_s5] sm:$0xff]  ;;  %v920_v43 = vld [vmem:[%s1897_s9 + $0x18] sm:$0xff] }
  0x2d   : > { %s1708_s10 = sshll.u32 %s1925_s21, 3  ;;  %v709_v9 = vsel %vm707_vm2, 1, %v1542_v8  ;;  %v1282_v31 = vld [vmem:[%s1894_s6] ss:$0 sm:$0xff]  ;;  %v919_v44 = vld [vmem:[%s1897_s9 + $0x10] sm:$0xff]  ;;  %v918_v45 = vld [vmem:[%s1897_s9 + $0x8] sm:$0xff] }
  0x2e   : > { %s598_s17 = scalar_lea.vmem %s1889_s1, %s1708_s10  ;;  %s594_s26 = scalar_lea.vmem %s1888_s0, %s1708_s10  ;;  %v712_v7 = vsub.s32 0, %v701_v6  ;;  %vm708_vm3 = vcmp.le.s32.totalorder %v705_v10, %v701_v6  ;;  %v917_v46 = vld [vmem:[%s1897_s9] sm:$0xff]  ;;  %v1025_v56 = vld [vmem:[%s1899_s11 + $0x78] sm:$0xff]  ;;  %v1024_v57 = vld [vmem:[%s1899_s11 + $0x70] sm:$0xff] }
  0x2f   : > { %v618_v1 = vld [vmem:[%s598_s17] sm:$0xff]  ;;  %s602_s15 = scalar_lea.vmem %s1890_s2, %s1708_s10  ;;  %s609_s21 = scalar_lea.vmem %s1891_s3, %s1708_s10  ;;  %1357 = vmatpush3.msra.mxu1 %v1025_v56  ;;  %v1023_v58 = vld [vmem:[%s1899_s11 + $0x68] sm:$0xff]  ;;  %v1021_v60 = vld [vmem:[%s1899_s11 + $0x58] sm:$0xff] }
  0x30   : > { %v617_v2 = vld [vmem:[%s594_s26] sm:$0xff]  ;;  %1325 = vmatpush3.xpose.msk.msra.mxu0 %vm622_vm1, %v618_v1  ;;  %v713_v11 = vrot.slane %v709_v9, %v712_v7  ;;  %1358 = vmatprep.subr.mxu1 %v1540_v0  ;;  %v1020_v61 = vld [vmem:[%s1899_s11 + $0x50] sm:$0xff]  ;;  %v1019_v62 = vld [vmem:[%s1899_s11 + $0x48] sm:$0xff]  ;;  %s1912_s18 = sld [smem:[#allocation5_spill]] }
  0x31   : > { %v621_v3 = vmul.f32 0.17677669, %v617_v2  ;;  %1329 = vmatprep.subr.mxu0 %v1540_v0  ;;  %v619_v21 = vld [vmem:[%s602_s15] sm:$0xff]  ;;  %1359 = vmatpush3.msra.mxu1 %v1024_v57  ;;  %v1017_v1 = vld [vmem:[%s1899_s11 + $0x38] sm:$0xff]  ;;  %v1016_v2 = vld [vmem:[%s1899_s11 + $0x30] sm:$0xff]  ;;  %s1914_s12 = sld [smem:[#allocation7_spill]] }
  0x32   : > { %vm714_vm4 = vcmp.eq.s32.totalorder %v713_v11, 1  ;;  %v620_v32 = vld [vmem:[%s609_s21] sm:$0xff]  ;;  %1360 = vmatprep.subr.mxu1 %v1540_v0  ;;  %v1013_v5 = vld [vmem:[%s1899_s11 + $0x18] sm:$0xff]  ;;  %v1012_v6 = vld [vmem:[%s1899_s11 + $0x10] sm:$0xff]  ;;  %s1913_s21 = sld [smem:[#allocation6_spill]] }
  0x33   : > { %1327 = vmatmul.mubr.msk.f32.vlgmr.msra.gmra.mxu0 %vm622_vm1, %v621_v3  ;;  %vm715_vm5 = vmand %vm708_vm3, %vm714_vm4  ;;  %v1284_v51 = vld [vmem:[%s1895_s7] ss:$0 sm:$0xff]  ;;  %1361 = vmatpush3.msra.mxu1 %v1023_v58  ;;  %v1015_v3 = vld [vmem:[%s1899_s11 + $0x28] sm:$0xff]  ;;  %s1915_s16 = sld [smem:[#allocation8_spill]] }
  0x34   : > { %1331 = vmatprep.mubr.msk.f32.mxu0 %vm1541_vm0, %v1540_v0  ;;  %1330 = vmatpush3.msra.mxu0 %v619_v21  ;;  %v1285_v53 = vld [vmem:[%s1896_s8] ss:$0 sm:$0xff]  ;;  %v1011_v7 = vld [vmem:[%s1899_s11 + $0x8] sm:$0xff]  ;;  %s1916_s17 = sld [smem:[#allocation9_spill]] }
  0x35   : > { %1334 = vmatprep.subr.mxu0 %v1540_v0  ;;  %1362 = vmatprep.subr.mxu1 %v1540_v0  ;;  %v1022_v59 = vld [vmem:[%s1899_s11 + $0x60] sm:$0xff] }
  0x36   : > { %1363 = vmatpush3.msra.mxu1 %v1022_v59  ;;  %v1018_v63 = vld [vmem:[%s1899_s11 + $0x40] sm:$0xff] }
  0x37   : > { %1364 = vmatprep.subr.mxu1 %v1540_v0  ;;  %v1014_v4 = vld [vmem:[%s1899_s11 + $0x20] sm:$0xff] }
  0x38   : > { %1365 = vmatpush3.msra.mxu1 %v1021_v60  ;;  %v1010_v8 = vld [vmem:[%s1899_s11] sm:$0xff] }
  0x39   : > { %1366 = vmatprep.subr.mxu1 %v1540_v0  ;;  %v1286_v9 = vld [vmem:[%s1912_s18] ss:$0 sm:$0xff] }
  0x3a   : > { %1367 = vmatpush3.msra.mxu1 %v1020_v61  ;;  %s616_s18 = scalar_lea.vmem %s1916_s17, %s1708_s10 }
  0x3b   : > { %1368 = vmatprep.subr.mxu1 %v1540_v0 }
  0x3c   : > { %1369 = vmatpush3.msra.mxu1 %v1019_v62 }
  0x3d   : > { %1370 = vmatprep.subr.mxu1 %v1540_v0 }
  0x3e   : > { %1371 = vmatpush3.msra.mxu1 %v1018_v63 }
  0x3f   : > { %1372 = vmatprep.subr.mxu1 %v1540_v0 }
  0x40   : > { %1373 = vmatpush3.msra.mxu1 %v1017_v1 }
  0x41   : > { %1374 = vmatprep.subr.mxu1 %v1540_v0 }
  0x42   : > { %1375 = vmatpush3.msra.mxu1 %v1016_v2 }
  0x43   : > { %1376 = vmatprep.subr.mxu1 %v1540_v0 }
  0x44   : > { %1377 = vmatpush3.msra.mxu1 %v1015_v3 }
  0x45   : > { %1378 = vmatprep.subr.mxu1 %v1540_v0 }
  0x46   : > { %1379 = vmatpush3.msra.mxu1 %v1014_v4 }
  0x47   : > { %1380 = vmatprep.subr.mxu1 %v1540_v0 }
  0x48   : > { %1381 = vmatpush3.msra.mxu1 %v1013_v5 }
  0x49   : > { %1382 = vmatprep.subr.mxu1 %v1540_v0 }
  0x4a   : > { %1383 = vmatpush3.msra.mxu1 %v1012_v6 }
  0x4b   : > { %1384 = vmatprep.subr.mxu1 %v1540_v0 }
  0x4c   : > { %1385 = vmatpush3.msra.mxu1 %v1011_v7 }
  0x4d   : > { %1386 = vmatprep.subr.mxu1 %v1540_v0 }
  0x4e   : > { %1387 = vmatpush3.msra.mxu1 %v1010_v8 }
  0xf3   : > { %v695_v12 = vpop.f32.mrf.mxu0 }
  0xf4   : > { %v716_v13 = vsel %vm715_vm5, %v695_v12, -1e+09 }
  0xf5   : > { %v1328_v14 = vpop.f32.mrf.mxu0  ;;  %v718_v15 = vsel %vm717_vm6, %v716_v13, -inf }
  0xf6   : > { %719 = vmax.xlane.f32.xlu0 %v718_v15 }
 0x17f   : > { %v720_v16 = vpop.xlane.xlu0 %719 }
 0x180   : > { %v721_v17 = vsub.f32 %v716_v13, %v720_v16 }
 0x182   : > { %v722_v18 = vmul.f32 1.442695, %v721_v17 }
 0x184   : > { %1449 = vpow2.f32 %v722_v18 }
 0x191   : > { %v1450_v19 = vpop.eup %1449 }
 0x192   : > { %v724_v20 = vsel %vm717_vm6, %v1450_v19, 0.0 }
 0x193   : > { %725 = vadd.xlane.f32.xlu0 %v724_v20 }
 0x21c   : > { %v726_v22 = vpop.xlane.xlu0 %725 }
 0x21d   : > { %1451 = vrcp.f32 %v726_v22 }
 0x22a   : > { %v1452_v23 = vpop.eup %1451 }
 0x22b   : > { %v728_v24 = vmul.f32 %v1452_v23, %v1450_v19 }
 0x22d   : > { %1332 = vmatmul.mubr.msk.f32.vlgmr.msra.gmra.mxu0 %vm717_vm6, %v728_v24 }
 0x22e   : > { %1335 = vmatpush3.msra.mxu0 %v805_v25  ;;  %1342 = vmatprep.mubr.msk.f32.mxu0 %vm1541_vm0, %v1540_v0 }
 0x22f   : > { %1336 = vmatprep.subr.mxu0 %v1540_v0 }
 0x230   : > { %1337 = vmatpush3.msra.mxu0 %v804_v26 }
 0x231   : > { %1338 = vmatprep.subr.mxu0 %v1540_v0 }
 0x232   : > { %1339 = vmatpush3.msra.mxu0 %v803_v27 }
 0x233   : > { %1340 = vmatprep.subr.mxu0 %v1540_v0 }
 0x234   : > { %1341 = vmatpush3.msra.mxu0 %v802_v28 }
 0x235   : > { %1345 = vmatprep.subr.mxu0 %v1540_v0 }
 0x2ed   : > { %v798_v29 = vpop.f32.mrf.mxu0 }
 0x2ee   : > { %1343 = vmatmul.mubr.msk.f32.vlgmr.msra.gmra.mxu0 %vm622_vm1, %v798_v29 }
 0x2ef   : > { %v1333_v30 = vpop.f32.mrf.mxu0  ;;  %1353 = vmatprep.mubr.msk.f32.mxu0 %vm1541_vm0, %v1540_v0  ;;  %1346 = vmatpush3.msra.mxu0 %v920_v43 }
 0x2f0   : > { %1347 = vmatprep.subr.mxu0 %v1540_v0 }
 0x2f1   : > { %1348 = vmatpush3.msra.mxu0 %v919_v44 }
 0x2f2   : > { %1349 = vmatprep.subr.mxu0 %v1540_v0 }
 0x2f3   : > { %1350 = vmatpush3.msra.mxu0 %v918_v45 }
 0x2f4   : > { %1351 = vmatprep.subr.mxu0 %v1540_v0  ;;  %v1288_v0 = vld [vmem:[%s1913_s21] ss:$0 sm:$0xff] }
 0x2f5   : > { %1352 = vmatpush3.msra.mxu0 %v917_v46 }
 0x3ae   : > { %v882_v33 = vpop.f32.mrf.mxu0 }
 0x3af   : > { %v883_v34 = vadd.f32 %v1282_v31, %v882_v33 }
 0x3b0   : > { %v1344_v35 = vpop.f32.mrf.mxu0 }
 0x3b1   : > { %v1759_v36 = vadd.f32 %v883_v34, %v620_v32 }
 0x3b3   : > { %v889_v37 = vsel %vm622_vm1, %v1759_v36, 0.0 }
 0x3b4   : > { %890 = vadd.xlane.f32.xlu1 %v889_v37 }
 0x43d   : > { %v891_v38 = vpop.xlane.xlu1 %890 }
 0x43e   : > { %v893_v39 = vmul.f32 0.03125, %v891_v38  ;;  %v1290_v38 = vld [vmem:[%s1915_s16] ss:$0 sm:$0xff] }
 0x440   : > { %v894_v40 = vsub.f32 %v1759_v36, %v893_v39 }
 0x442   : > { %v895_v41 = vmul.f32 %v894_v40, %v894_v40 }
 0x444   : > { %v896_v42 = vsel %vm622_vm1, %v895_v41, 0.0 }
 0x445   : > { %897 = vadd.xlane.f32.xlu1 %v896_v42 }
 0x4ce   : > { %v898_v47 = vpop.xlane.xlu1 %897 }
 0x4cf   : > { %v899_v48 = vmul.f32 0.03125, %v898_v47 }
 0x4d1   : > { %v900_v49 = vadd.f32 1e-05, %v899_v48 }
 0x4d3   : > { %1453 = vrsqrt.f32 %v900_v49 }
 0x4e0   : > { %v1454_v50 = vpop.eup %1453 }
 0x4e1   : > { %v902_v52 = vmul.f32 %v1454_v50, %v894_v40 }
 0x4e3   : > { %v909_v54 = vmul.f32 %v1284_v51, %v902_v52 }
 0x4e5   : > { %v916_v55 = vadd.f32 %v1285_v53, %v909_v54 }
 0x4e7   : > { %1354 = vmatmul.mubr.msk.f32.vlgmr.msra.gmra.mxu0 %vm622_vm1, %v916_v55 }
 0x5a7   : > { %v997_v10 = vpop.f32.mrf.mxu0 }
 0x5a8   : > { %v998_v11 = vadd.f32 %v1286_v9, %v997_v10 }
 0x5a9   : > { %v1355_v12 = vpop.f32.mrf.mxu0 }
 0x5aa   : > { %v1001_v13 = vmul.f32 %v998_v11, %v998_v11 }
 0x5ac   : > { %v1002_v14 = vmul.f32 %v1001_v13, %v998_v11 }
 0x5ae   : > { %v1003_v15 = vmul.f32 0.044715, %v1002_v14 }
 0x5b0   : > { %v1004_v16 = vadd.f32 %v1003_v15, %v998_v11 }
 0x5b2   : > { %v1005_v17 = vmul.f32 0.7978846, %v1004_v16 }
 0x5b4   : > { %1455 = vtanh.f32 %v1005_v17 }
 0x5c1   : > { %v1456_v18 = vpop.eup %1455 }
 0x5c2   : > { %v1007_v19 = vadd.f32 1.0, %v1456_v18 }
 0x5c4   : > { %v1008_v20 = vmul.f32 0.5, %v1007_v19 }
 0x5c6   : > { %v1009_v21 = vmul.f32 %v1008_v20, %v998_v11 }
 0x5c8   : > { %1389 = vmatmul.mubr.f32.vlgmr.msra.gmra.mxu1 %v1009_v21 }
 0x688   : > { %v1099_v22 = vpop.f32.mrf.mxu1 }
 0x689   : > { %v1100_v23 = vadd.f32 %v1288_v0, %v1099_v22 }
 0x68a   : > { %v1390_v24 = vpop.f32.mrf.mxu1 }
 0x68b   : > { %v1103_v25 = vadd.f32 %v1100_v23, %v1759_v36  ;;  %v1289_v36 = vld [vmem:[%s1914_s12] ss:$0 sm:$0xff] }
 0x68d   : > { %v1106_v26 = vsel %vm622_vm1, %v1103_v25, 0.0 }
 0x68e   : > { %1107 = vadd.xlane.f32.xlu0 %v1106_v26 }
 0x717   : > { %v1108_v27 = vpop.xlane.xlu0 %1107 }
 0x718   : > { %v1109_v28 = vmul.f32 0.03125, %v1108_v27 }
 0x71a   : > { %v1110_v29 = vsub.f32 %v1103_v25, %v1109_v28 }
 0x71c   : > { %v1111_v30 = vmul.f32 %v1110_v29, %v1110_v29 }
 0x71e   : > { %v1112_v31 = vsel %vm622_vm1, %v1111_v30, 0.0 }
 0x71f   : > { %1113 = vadd.xlane.f32.xlu1 %v1112_v31 }
 0x7a8   : > { %v1114_v32 = vpop.xlane.xlu1 %1113 }
 0x7a9   : > { %v1115_v33 = vmul.f32 0.03125, %v1114_v32 }
 0x7ab   : > { %v1116_v34 = vadd.f32 1e-05, %v1115_v33 }
 0x7ad   : > { %1457 = vrsqrt.f32 %v1116_v34 }
 0x7ba   : > { %v1458_v35 = vpop.eup %1457 }
 0x7bb   : > { %v1118_v37 = vmul.f32 %v1458_v35, %v1110_v29 }
 0x7bd   : > { %v1125_v39 = vmul.f32 %v1289_v36, %v1118_v37 }
 0x7bf   : > { %v1132_v40 = vadd.f32 %v1290_v38, %v1125_v39 }
 0x7c1   : > { %1133 = vst.msk [vmem:[%s616_s18] sm:$0xff] %vm622_vm1, %v1132_v40 }
 0x7c2 PF: > { %s28_s23 = sadd.s32 1, %s1537_s23   ;;  %s1917_s18 = smov %s1521_s19 }
 0x7c3   : > { %p25_p7 = scmp.ge.s32.totalorder %s28_s23, 4   ;;  %s1918_s19 = smov %s1525_s20 }
 0x7c4   : > { %s1919_s20 = smov %s1672_s30  ;;  %s1920_s21 = smov %s1533_s22 }
 0x7c5   : > { %s1921_s22 = smov %s1923_s25  ;;  %27 = sbr.rel (!%p25_p7) target bundleno = 10 (0xa), region = 132 }
 0x7ca   :  { %1159 = vsyncpa [#allocation3], 1 }
 0x7cb   :  { %1161 = vsyncpa [#allocation3 + $0x1], 1 }

</bundles_post_ra>
